<compile_context>
chip_gen: v6e
topology: v6e:2x2x1
jax: 0.10.0
libtpu: 0.0.40
codegen_flags: <defaults>
</compile_context>

<pallas_src>
import math
import jax
import jax.numpy as jnp
from jax.experimental import pallas as pl
from jax.experimental.pallas import tpu as pltpu


def _make_mhsa_kernel(S, E, num_heads):
    Dh = E // num_heads

    def kernel(x_ref, gamma_ref, beta_ref, wqkv_ref, bqkv_ref, wo_ref, bo_ref,
               o_ref, ctx_ref):
        # x_ref: (S, E) tile (batch dim squeezed by BlockSpec).
        x = x_ref[...].astype(jnp.float32)

        # ---- LayerNorm over last dim (eps=1e-5, PyTorch default), f32 ----
        mean = jnp.mean(x, axis=-1, keepdims=True)
        var = jnp.mean((x - mean) ** 2, axis=-1, keepdims=True)
        xn = (x - mean) * jax.lax.rsqrt(var + 1e-5)
        xn = xn * gamma_ref[...] + beta_ref[...]

        # ---- fused QKV projection: (S, E) @ (E, 3E) on the MXU ----
        # 1/sqrt(Dh) is pre-folded into the Q columns of W_qkv / b_qkv.
        qkv_f32 = jnp.dot(xn.astype(jnp.bfloat16), wqkv_ref[...],
                          preferred_element_type=jnp.float32) + bqkv_ref[...]
        # Single bf16 cast pass over (S, 3E); reused by every head below.
        qkv = qkv_f32.astype(jnp.bfloat16)

        # ---- per-head attention; ctx_h written into (S, E) scratch ----
        # TODO(synk): attention-weight dropout / output dropout not implemented
        # (training mode would need pltpu.prng_seed + pltpu.prng_random_bits).
        for h in range(num_heads):
            q_h = qkv[:, h * Dh:(h + 1) * Dh]                    # (S, Dh) bf16
            k_h = qkv[:, E + h * Dh:E + (h + 1) * Dh]            # (S, Dh) bf16
            v_h = qkv[:, 2 * E + h * Dh:2 * E + (h + 1) * Dh]    # (S, Dh) bf16

            # scores (S, S): contract over Dh without materializing k^T.
            s = jax.lax.dot_general(
                q_h, k_h, (((1,), (1,)), ((), ())),
                preferred_element_type=jnp.float32)

            # numerically stable softmax, normalization deferred to ctx:
            s = s - jnp.max(s, axis=-1, keepdims=True)
            p = jnp.exp(s)                                       # values in (0, 1]
            denom = jnp.sum(p, axis=-1, keepdims=True)           # (S, 1) >= 1

            ctx = jnp.dot(p.astype(jnp.bfloat16), v_h,
                          preferred_element_type=jnp.float32)    # (S, Dh) f32
            ctx = ctx * pl.reciprocal(denom, approx=True)        # EUP, not VALU

            # lane-concat of heads: writing into the scratch bounds the live
            # range of s / p / ctx for this head.
            ctx_ref[:, h * Dh:(h + 1) * Dh] = ctx.astype(jnp.bfloat16)

        # ---- fused output projection: one (S, E) @ (E, E) matmul ----
        attn = jnp.dot(ctx_ref[...], wo_ref[...],
                       preferred_element_type=jnp.float32) + bo_ref[...]

        # ---- residual ----
        o_ref[...] = (x + attn).astype(o_ref.dtype)

    return kernel


def multi_head_self_attention(x, gamma, beta, w_qkv, b_qkv, w_out, b_out,
                              num_heads):
    """x: (B, S, E).  w_qkv: (E, 3E) = in_proj_weight.T, w_out: (E, E) =
    out_proj.weight.T.  Returns (B, S, E)."""
    B, S, E = x.shape
    assert E % num_heads == 0, "embed_dim must be divisible by num_heads"
    Dh = E // num_heads
    scale = 1.0 / math.sqrt(Dh)

    kernel = _make_mhsa_kernel(S, E, num_heads)

    gamma2d = gamma.reshape(1, E).astype(jnp.float32)
    beta2d = beta.reshape(1, E).astype(jnp.float32)

    # Fold the 1/sqrt(Dh) attention scale into the Q portion of the QKV
    # projection (one-time weight transform; removes a per-step S*E multiply).
    w_qkv_s = w_qkv.astype(jnp.float32).at[:, :E].multiply(scale)
    b_qkv_s = b_qkv.astype(jnp.float32).at[:E].multiply(scale)

    bqkv2d = b_qkv_s.reshape(1, 3 * E)
    bo2d = b_out.reshape(1, E).astype(jnp.float32)
    # Weights as bf16: MXU fast path + half the weight VMEM / DMA bytes.
    wqkv_bf = w_qkv_s.astype(jnp.bfloat16)
    wo_bf = w_out.astype(jnp.bfloat16)

    def build(single_buffer_weights):
        pm = pl.Buffered(1) if single_buffer_weights else None

        def const_spec(shape):
            # Constant-index blocks (weights / biases / LN params): fetched
            # once, so single-buffering halves their VMEM footprint.
            zero_map = lambda b, _n=len(shape): (0,) * _n
            if pm is None:
                return pl.BlockSpec(shape, zero_map)
            return pl.BlockSpec(shape, zero_map, pipeline_mode=pm)

        # TODO(synk): for v7x with B == 1 (or odd B), add a second "parallel"
        # grid axis over query-row tiles so both TensorCores get work.
        return pl.pallas_call(
            kernel,
            out_shape=jax.ShapeDtypeStruct((B, S, E), x.dtype),
            grid_spec=pltpu.PrefetchScalarGridSpec(
                num_scalar_prefetch=0,
                grid=(B,),
                in_specs=[
                    pl.BlockSpec((None, S, E), lambda b: (b, 0, 0)),  # x
                    const_spec((1, E)),          # gamma
                    const_spec((1, E)),          # beta
                    const_spec((E, 3 * E)),      # W_qkv (bf16, scale folded)
                    const_spec((1, 3 * E)),      # b_qkv (scale folded)
                    const_spec((E, E)),          # W_out (bf16)
                    const_spec((1, E)),          # b_out
                ],
                out_specs=pl.BlockSpec((None, S, E), lambda b: (b, 0, 0)),
                scratch_shapes=[pltpu.VMEM((S, E), jnp.bfloat16)],  # ctx concat
            ),
            compiler_params=pltpu.CompilerParams(
                dimension_semantics=("parallel",),
                vmem_limit_bytes=32 * 1024 * 1024,  # v7x-safe (64 MiB physical)
            ),
        )

    args = (x, gamma2d, beta2d, wqkv_bf, bqkv2d, wo_bf, bo2d)
    try:
        return build(True)(*args)
    except Exception:
        # Fallback if this JAX build rejects pipeline_mode=pl.Buffered(1) on
        # constant-index blocks: identical semantics, default double-buffering.
        return build(False)(*args)


def _reference(x, gamma, beta, w_qkv, b_qkv, w_out, b_out, num_heads):
    """Pure-JAX f32 reference matching torch.nn.MultiheadAttention semantics."""
    B, S, E = x.shape
    Dh = E // num_heads
    mean = jnp.mean(x, axis=-1, keepdims=True)
    var = jnp.mean((x - mean) ** 2, axis=-1, keepdims=True)
    xn = (x - mean) / jnp.sqrt(var + 1e-5) * gamma + beta
    qkv = xn @ w_qkv + b_qkv
    q, k, v = jnp.split(qkv, 3, axis=-1)

    def heads(t):
        return t.reshape(B, S, num_heads, Dh).transpose(0, 2, 1, 3)

    q, k, v = heads(q), heads(k), heads(v)
    s = jnp.einsum('bhqd,bhkd->bhqk', q, k) / math.sqrt(Dh)
    p = jax.nn.softmax(s, axis=-1)
    ctx = jnp.einsum('bhqk,bhkd->bhqd', p, v)
    ctx = ctx.transpose(0, 2, 1, 3).reshape(B, S, E)
    return x + (ctx @ w_out + b_out)


if __name__ == "__main__":
    # Small shapes consistent with the module's forward: (B, S, E), H heads.
    B, S, E, H = 2, 8, 32, 4

    key = jax.random.PRNGKey(0)
    kx, kwq, kbq, kwo, kbo = jax.random.split(key, 5)

    x = jax.random.normal(kx, (B, S, E), dtype=jnp.float32)

    # LayerNorm params (PyTorch init: weight=1, bias=0)
    gamma = jnp.ones((E,), dtype=jnp.float32)
    beta = jnp.zeros((E,), dtype=jnp.float32)

    # Attention params, deterministic random init.
    # Stored as (in, out) so the kernel does row @ W, equivalent to PyTorch's
    # x @ in_proj_weight.T / x @ out_proj.weight.T.
    w_qkv = jax.random.normal(kwq, (E, 3 * E), dtype=jnp.float32) * 0.05
    b_qkv = jax.random.normal(kbq, (3 * E,), dtype=jnp.float32) * 0.05
    w_out = jax.random.normal(kwo, (E, E), dtype=jnp.float32) * 0.05
    b_out = jax.random.normal(kbo, (E,), dtype=jnp.float32) * 0.05

    out = multi_head_self_attention(x, gamma, beta, w_qkv, b_qkv, w_out,
                                    b_out, num_heads=H)
    jax.block_until_ready(out)

    ref = _reference(x, gamma, beta, w_qkv, b_qkv, w_out, b_out, num_heads=H)
    assert out.shape == (B, S, E)
    # bf16 matmul operands (f32 accumulation) + approx reciprocal -> relaxed
    # tolerance vs the f32 reference.
    assert jnp.allclose(out, ref, atol=2e-2, rtol=2e-2), "mismatch vs reference"

    print("KERNEL_OK")
</pallas_src>

<mosaic_0001>
module attributes {stable_mosaic.version = 11 : i64} {
  func.func @kernel(%arg0: i32, %arg1: memref<1x8x32xf32, #tpu.memory_space<vmem>>, %arg2: memref<1x32xf32, #tpu.memory_space<vmem>>, %arg3: memref<1x32xf32, #tpu.memory_space<vmem>>, %arg4: memref<32x96xbf16, #tpu.memory_space<vmem>>, %arg5: memref<1x96xf32, #tpu.memory_space<vmem>>, %arg6: memref<32x32xbf16, #tpu.memory_space<vmem>>, %arg7: memref<1x32xf32, #tpu.memory_space<vmem>>, %arg8: memref<1x8x32xf32, #tpu.memory_space<vmem>>, %arg9: memref<8x32xbf16, #tpu.memory_space<vmem>>) attributes {dimension_semantics = [#tpu.dimension_semantics<parallel>], iteration_bounds = array<i64: 2>, scalar_prefetch = 0 : i64, scratch_operands = 1 : i64, tpu.core_type = #tpu.core_type<tc>, window_params = [{transform_indices = @transform_0, window_bounds = array<i64: 1, 8, 32>}, {pipeline_mode = #tpu.pipeline_mode<synchronous>, transform_indices = @transform_1, window_bounds = array<i64: 1, 32>}, {pipeline_mode = #tpu.pipeline_mode<synchronous>, transform_indices = @transform_2, window_bounds = array<i64: 1, 32>}, {pipeline_mode = #tpu.pipeline_mode<synchronous>, transform_indices = @transform_3, window_bounds = array<i64: 32, 96>}, {pipeline_mode = #tpu.pipeline_mode<synchronous>, transform_indices = @transform_4, window_bounds = array<i64: 1, 96>}, {pipeline_mode = #tpu.pipeline_mode<synchronous>, transform_indices = @transform_5, window_bounds = array<i64: 32, 32>}, {pipeline_mode = #tpu.pipeline_mode<synchronous>, transform_indices = @transform_6, window_bounds = array<i64: 1, 32>}, {transform_indices = @transform_7, window_bounds = array<i64: 1, 8, 32>}]} {
    %c0 = arith.constant 0 : index
    %c0_0 = arith.constant 0 : index
    %c0_1 = arith.constant 0 : index
    %0 = vector.load %arg1[%c0, %c0_0, %c0_1] : memref<1x8x32xf32, #tpu.memory_space<vmem>>, vector<1x8x32xf32>
    %1 = vector.shape_cast %0 : vector<1x8x32xf32> to vector<8x32xf32>
    %cst = arith.constant dense<0.000000e+00> : vector<8xf32>
    %2 = vector.multi_reduction <add>, %1, %cst [1] : vector<8x32xf32> to vector<8xf32>
    %3 = vector.shape_cast %2 : vector<8xf32> to vector<8x1xf32>
    %cst_2 = arith.constant 3.200000e+01 : f32
    %4 = vector.broadcast %cst_2 : f32 to vector<8x1xf32>
    %5 = arith.divf %3, %4 : vector<8x1xf32>
    %6 = vector.broadcast %5 : vector<8x1xf32> to vector<8x32xf32>
    %7 = arith.subf %1, %6 : vector<8x32xf32>
    %8 = arith.mulf %7, %7 : vector<8x32xf32>
    %cst_3 = arith.constant dense<0.000000e+00> : vector<8xf32>
    %9 = vector.multi_reduction <add>, %8, %cst_3 [1] : vector<8x32xf32> to vector<8xf32>
    %10 = vector.shape_cast %9 : vector<8xf32> to vector<8x1xf32>
    %cst_4 = arith.constant 3.200000e+01 : f32
    %11 = vector.broadcast %cst_4 : f32 to vector<8x1xf32>
    %12 = arith.divf %10, %11 : vector<8x1xf32>
    %13 = vector.broadcast %5 : vector<8x1xf32> to vector<8x32xf32>
    %14 = arith.subf %1, %13 : vector<8x32xf32>
    %cst_5 = arith.constant 9.99999974E-6 : f32
    %15 = vector.broadcast %cst_5 : f32 to vector<8x1xf32>
    %16 = arith.addf %12, %15 : vector<8x1xf32>
    %17 = math.rsqrt %16 : vector<8x1xf32>
    %18 = vector.broadcast %17 : vector<8x1xf32> to vector<8x32xf32>
    %19 = arith.mulf %14, %18 : vector<8x32xf32>
    %c0_6 = arith.constant 0 : index
    %c0_7 = arith.constant 0 : index
    %20 = vector.load %arg2[%c0_6, %c0_7] : memref<1x32xf32, #tpu.memory_space<vmem>>, vector<1x32xf32>
    %21 = vector.broadcast %20 : vector<1x32xf32> to vector<8x32xf32>
    %22 = arith.mulf %19, %21 : vector<8x32xf32>
    %c0_8 = arith.constant 0 : index
    %c0_9 = arith.constant 0 : index
    %23 = vector.load %arg3[%c0_8, %c0_9] : memref<1x32xf32, #tpu.memory_space<vmem>>, vector<1x32xf32>
    %24 = vector.broadcast %23 : vector<1x32xf32> to vector<8x32xf32>
    %25 = arith.addf %22, %24 : vector<8x32xf32>
    %26 = arith.truncf %25 : vector<8x32xf32> to vector<8x32xbf16>
    %c0_10 = arith.constant 0 : index
    %c0_11 = arith.constant 0 : index
    %27 = vector.load %arg4[%c0_10, %c0_11] : memref<32x96xbf16, #tpu.memory_space<vmem>>, vector<32x96xbf16>
    %cst_12 = arith.constant dense<0.000000e+00> : vector<8x96xf32>
    %28 = tpu.matmul %26, %27, %cst_12 {dimension_numbers = #tpu.dot_dimension_numbers<[1], [0], [0], [1], [0, 0, 1, 1], [], []>} : vector<8x32xbf16>, vector<32x96xbf16>, vector<8x96xf32> -> vector<8x96xf32>
    %c0_13 = arith.constant 0 : index
    %c0_14 = arith.constant 0 : index
    %29 = vector.load %arg5[%c0_13, %c0_14] : memref<1x96xf32, #tpu.memory_space<vmem>>, vector<1x96xf32>
    %30 = vector.broadcast %29 : vector<1x96xf32> to vector<8x96xf32>
    %31 = arith.addf %28, %30 : vector<8x96xf32>
    %32 = arith.truncf %31 : vector<8x96xf32> to vector<8x96xbf16>
    %33 = vector.extract_strided_slice %32 {offsets = [0, 0], sizes = [8, 8], strides = [1, 1]} : vector<8x96xbf16> to vector<8x8xbf16>
    %34 = vector.extract_strided_slice %32 {offsets = [0, 32], sizes = [8, 8], strides = [1, 1]} : vector<8x96xbf16> to vector<8x8xbf16>
    %35 = vector.extract_strided_slice %32 {offsets = [0, 64], sizes = [8, 8], strides = [1, 1]} : vector<8x96xbf16> to vector<8x8xbf16>
    %cst_15 = arith.constant dense<0.000000e+00> : vector<8x8xf32>
    %36 = tpu.matmul %33, %34, %cst_15 {dimension_numbers = #tpu.dot_dimension_numbers<[1], [1], [0], [0], [0, 0, 1, 0], [], []>} : vector<8x8xbf16>, vector<8x8xbf16>, vector<8x8xf32> -> vector<8x8xf32>
    %cst_16 = arith.constant dense<0xFF800000> : vector<8xf32>
    %37 = vector.multi_reduction <maximumf>, %36, %cst_16 [1] : vector<8x8xf32> to vector<8xf32>
    %38 = vector.shape_cast %37 : vector<8xf32> to vector<8x1xf32>
    %39 = vector.broadcast %38 : vector<8x1xf32> to vector<8x8xf32>
    %40 = arith.subf %36, %39 : vector<8x8xf32>
    %41 = math.exp %40 : vector<8x8xf32>
    %cst_17 = arith.constant dense<0.000000e+00> : vector<8xf32>
    %42 = vector.multi_reduction <add>, %41, %cst_17 [1] : vector<8x8xf32> to vector<8xf32>
    %43 = vector.shape_cast %42 : vector<8xf32> to vector<8x1xf32>
    %44 = arith.truncf %41 : vector<8x8xf32> to vector<8x8xbf16>
    %cst_18 = arith.constant dense<0.000000e+00> : vector<8x8xf32>
    %45 = tpu.matmul %44, %35, %cst_18 {dimension_numbers = #tpu.dot_dimension_numbers<[1], [0], [0], [1], [0, 0, 1, 1], [], []>} : vector<8x8xbf16>, vector<8x8xbf16>, vector<8x8xf32> -> vector<8x8xf32>
    %46 = tpu.reciprocal %43 {approx = true} : vector<8x1xf32> -> vector<8x1xf32>
    %47 = vector.broadcast %46 : vector<8x1xf32> to vector<8x8xf32>
    %48 = arith.mulf %45, %47 : vector<8x8xf32>
    %49 = arith.truncf %48 : vector<8x8xf32> to vector<8x8xbf16>
    %c0_19 = arith.constant 0 : index
    %c0_20 = arith.constant 0 : index
    %50 = vector.load %arg9[%c0_19, %c0_20] : memref<8x32xbf16, #tpu.memory_space<vmem>>, vector<8x8xbf16>
    tpu.vector_store %arg9[%c0_19, %c0_20], %49 {strides = array<i32>} : memref<8x32xbf16, #tpu.memory_space<vmem>>, vector<8x8xbf16>,
    %51 = vector.extract_strided_slice %32 {offsets = [0, 8], sizes = [8, 8], strides = [1, 1]} : vector<8x96xbf16> to vector<8x8xbf16>
    %52 = vector.extract_strided_slice %32 {offsets = [0, 40], sizes = [8, 8], strides = [1, 1]} : vector<8x96xbf16> to vector<8x8xbf16>
    %53 = vector.extract_strided_slice %32 {offsets = [0, 72], sizes = [8, 8], strides = [1, 1]} : vector<8x96xbf16> to vector<8x8xbf16>
    %cst_21 = arith.constant dense<0.000000e+00> : vector<8x8xf32>
    %54 = tpu.matmul %51, %52, %cst_21 {dimension_numbers = #tpu.dot_dimension_numbers<[1], [1], [0], [0], [0, 0, 1, 0], [], []>} : vector<8x8xbf16>, vector<8x8xbf16>, vector<8x8xf32> -> vector<8x8xf32>
    %cst_22 = arith.constant dense<0xFF800000> : vector<8xf32>
    %55 = vector.multi_reduction <maximumf>, %54, %cst_22 [1] : vector<8x8xf32> to vector<8xf32>
    %56 = vector.shape_cast %55 : vector<8xf32> to vector<8x1xf32>
    %57 = vector.broadcast %56 : vector<8x1xf32> to vector<8x8xf32>
    %58 = arith.subf %54, %57 : vector<8x8xf32>
    %59 = math.exp %58 : vector<8x8xf32>
    %cst_23 = arith.constant dense<0.000000e+00> : vector<8xf32>
    %60 = vector.multi_reduction <add>, %59, %cst_23 [1] : vector<8x8xf32> to vector<8xf32>
    %61 = vector.shape_cast %60 : vector<8xf32> to vector<8x1xf32>
    %62 = arith.truncf %59 : vector<8x8xf32> to vector<8x8xbf16>
    %cst_24 = arith.constant dense<0.000000e+00> : vector<8x8xf32>
    %63 = tpu.matmul %62, %53, %cst_24 {dimension_numbers = #tpu.dot_dimension_numbers<[1], [0], [0], [1], [0, 0, 1, 1], [], []>} : vector<8x8xbf16>, vector<8x8xbf16>, vector<8x8xf32> -> vector<8x8xf32>
    %64 = tpu.reciprocal %61 {approx = true} : vector<8x1xf32> -> vector<8x1xf32>
    %65 = vector.broadcast %64 : vector<8x1xf32> to vector<8x8xf32>
    %66 = arith.mulf %63, %65 : vector<8x8xf32>
    %67 = arith.truncf %66 : vector<8x8xf32> to vector<8x8xbf16>
    %c0_25 = arith.constant 0 : index
    %c8 = arith.constant 8 : index
    %68 = vector.load %arg9[%c0_25, %c8] : memref<8x32xbf16, #tpu.memory_space<vmem>>, vector<8x8xbf16>
    tpu.vector_store %arg9[%c0_25, %c8], %67 {strides = array<i32>} : memref<8x32xbf16, #tpu.memory_space<vmem>>, vector<8x8xbf16>,
    %69 = vector.extract_strided_slice %32 {offsets = [0, 16], sizes = [8, 8], strides = [1, 1]} : vector<8x96xbf16> to vector<8x8xbf16>
    %70 = vector.extract_strided_slice %32 {offsets = [0, 48], sizes = [8, 8], strides = [1, 1]} : vector<8x96xbf16> to vector<8x8xbf16>
    %71 = vector.extract_strided_slice %32 {offsets = [0, 80], sizes = [8, 8], strides = [1, 1]} : vector<8x96xbf16> to vector<8x8xbf16>
    %cst_26 = arith.constant dense<0.000000e+00> : vector<8x8xf32>
    %72 = tpu.matmul %69, %70, %cst_26 {dimension_numbers = #tpu.dot_dimension_numbers<[1], [1], [0], [0], [0, 0, 1, 0], [], []>} : vector<8x8xbf16>, vector<8x8xbf16>, vector<8x8xf32> -> vector<8x8xf32>
    %cst_27 = arith.constant dense<0xFF800000> : vector<8xf32>
    %73 = vector.multi_reduction <maximumf>, %72, %cst_27 [1] : vector<8x8xf32> to vector<8xf32>
    %74 = vector.shape_cast %73 : vector<8xf32> to vector<8x1xf32>
    %75 = vector.broadcast %74 : vector<8x1xf32> to vector<8x8xf32>
    %76 = arith.subf %72, %75 : vector<8x8xf32>
    %77 = math.exp %76 : vector<8x8xf32>
    %cst_28 = arith.constant dense<0.000000e+00> : vector<8xf32>
    %78 = vector.multi_reduction <add>, %77, %cst_28 [1] : vector<8x8xf32> to vector<8xf32>
    %79 = vector.shape_cast %78 : vector<8xf32> to vector<8x1xf32>
    %80 = arith.truncf %77 : vector<8x8xf32> to vector<8x8xbf16>
    %cst_29 = arith.constant dense<0.000000e+00> : vector<8x8xf32>
    %81 = tpu.matmul %80, %71, %cst_29 {dimension_numbers = #tpu.dot_dimension_numbers<[1], [0], [0], [1], [0, 0, 1, 1], [], []>} : vector<8x8xbf16>, vector<8x8xbf16>, vector<8x8xf32> -> vector<8x8xf32>
    %82 = tpu.reciprocal %79 {approx = true} : vector<8x1xf32> -> vector<8x1xf32>
    %83 = vector.broadcast %82 : vector<8x1xf32> to vector<8x8xf32>
    %84 = arith.mulf %81, %83 : vector<8x8xf32>
    %85 = arith.truncf %84 : vector<8x8xf32> to vector<8x8xbf16>
    %c0_30 = arith.constant 0 : index
    %c16 = arith.constant 16 : index
    %86 = vector.load %arg9[%c0_30, %c16] : memref<8x32xbf16, #tpu.memory_space<vmem>>, vector<8x8xbf16>
    tpu.vector_store %arg9[%c0_30, %c16], %85 {strides = array<i32>} : memref<8x32xbf16, #tpu.memory_space<vmem>>, vector<8x8xbf16>,
    %87 = vector.extract_strided_slice %32 {offsets = [0, 24], sizes = [8, 8], strides = [1, 1]} : vector<8x96xbf16> to vector<8x8xbf16>
    %88 = vector.extract_strided_slice %32 {offsets = [0, 56], sizes = [8, 8], strides = [1, 1]} : vector<8x96xbf16> to vector<8x8xbf16>
    %89 = vector.extract_strided_slice %32 {offsets = [0, 88], sizes = [8, 8], strides = [1, 1]} : vector<8x96xbf16> to vector<8x8xbf16>
    %cst_31 = arith.constant dense<0.000000e+00> : vector<8x8xf32>
    %90 = tpu.matmul %87, %88, %cst_31 {dimension_numbers = #tpu.dot_dimension_numbers<[1], [1], [0], [0], [0, 0, 1, 0], [], []>} : vector<8x8xbf16>, vector<8x8xbf16>, vector<8x8xf32> -> vector<8x8xf32>
    %cst_32 = arith.constant dense<0xFF800000> : vector<8xf32>
    %91 = vector.multi_reduction <maximumf>, %90, %cst_32 [1] : vector<8x8xf32> to vector<8xf32>
    %92 = vector.shape_cast %91 : vector<8xf32> to vector<8x1xf32>
    %93 = vector.broadcast %92 : vector<8x1xf32> to vector<8x8xf32>
    %94 = arith.subf %90, %93 : vector<8x8xf32>
    %95 = math.exp %94 : vector<8x8xf32>
    %cst_33 = arith.constant dense<0.000000e+00> : vector<8xf32>
    %96 = vector.multi_reduction <add>, %95, %cst_33 [1] : vector<8x8xf32> to vector<8xf32>
    %97 = vector.shape_cast %96 : vector<8xf32> to vector<8x1xf32>
    %98 = arith.truncf %95 : vector<8x8xf32> to vector<8x8xbf16>
    %cst_34 = arith.constant dense<0.000000e+00> : vector<8x8xf32>
    %99 = tpu.matmul %98, %89, %cst_34 {dimension_numbers = #tpu.dot_dimension_numbers<[1], [0], [0], [1], [0, 0, 1, 1], [], []>} : vector<8x8xbf16>, vector<8x8xbf16>, vector<8x8xf32> -> vector<8x8xf32>
    %100 = tpu.reciprocal %97 {approx = true} : vector<8x1xf32> -> vector<8x1xf32>
    %101 = vector.broadcast %100 : vector<8x1xf32> to vector<8x8xf32>
    %102 = arith.mulf %99, %101 : vector<8x8xf32>
    %103 = arith.truncf %102 : vector<8x8xf32> to vector<8x8xbf16>
    %c0_35 = arith.constant 0 : index
    %c24 = arith.constant 24 : index
    %104 = vector.load %arg9[%c0_35, %c24] : memref<8x32xbf16, #tpu.memory_space<vmem>>, vector<8x8xbf16>
    tpu.vector_store %arg9[%c0_35, %c24], %103 {strides = array<i32>} : memref<8x32xbf16, #tpu.memory_space<vmem>>, vector<8x8xbf16>,
    %c0_36 = arith.constant 0 : index
    %c0_37 = arith.constant 0 : index
    %105 = vector.load %arg9[%c0_36, %c0_37] : memref<8x32xbf16, #tpu.memory_space<vmem>>, vector<8x32xbf16>
    %c0_38 = arith.constant 0 : index
    %c0_39 = arith.constant 0 : index
    %106 = vector.load %arg6[%c0_38, %c0_39] : memref<32x32xbf16, #tpu.memory_space<vmem>>, vector<32x32xbf16>
    %cst_40 = arith.constant dense<0.000000e+00> : vector<8x32xf32>
    %107 = tpu.matmul %105, %106, %cst_40 {dimension_numbers = #tpu.dot_dimension_numbers<[1], [0], [0], [1], [0, 0, 1, 1], [], []>} : vector<8x32xbf16>, vector<32x32xbf16>, vector<8x32xf32> -> vector<8x32xf32>
    %c0_41 = arith.constant 0 : index
    %c0_42 = arith.constant 0 : index
    %108 = vector.load %arg7[%c0_41, %c0_42] : memref<1x32xf32, #tpu.memory_space<vmem>>, vector<1x32xf32>
    %109 = vector.broadcast %108 : vector<1x32xf32> to vector<8x32xf32>
    %110 = arith.addf %107, %109 : vector<8x32xf32>
    %111 = arith.addf %1, %110 : vector<8x32xf32>
    %c0_43 = arith.constant 0 : index
    %c0_44 = arith.constant 0 : index
    %c0_45 = arith.constant 0 : index
    %112 = vector.load %arg8[%c0_43, %c0_44, %c0_45] : memref<1x8x32xf32, #tpu.memory_space<vmem>>, vector<1x8x32xf32>
    %113 = vector.shape_cast %112 : vector<1x8x32xf32> to vector<8x32xf32>
    %114 = vector.shape_cast %111 : vector<8x32xf32> to vector<1x8x32xf32>
    tpu.vector_store %arg8[%c0_43, %c0_44, %c0_45], %114 {strides = array<i32>} : memref<1x8x32xf32, #tpu.memory_space<vmem>>, vector<1x8x32xf32>,
    return
  }
  func.func @transform_0(%arg0: i32) -> (i32, i32, i32) {
    %c0_i32 = arith.constant 0 : i32
    %c0_i32_0 = arith.constant 0 : i32
    %c0_i32_1 = arith.constant 0 : i32
    return %arg0, %c0_i32, %c0_i32_0 : i32, i32, i32
  }
  func.func @transform_1(%arg0: i32) -> (i32, i32) {
    %c0_i32 = arith.constant 0 : i32
    %c0_i32_0 = arith.constant 0 : i32
    %c0_i32_1 = arith.constant 0 : i32
    return %c0_i32, %c0_i32_0 : i32, i32
  }
  func.func @transform_2(%arg0: i32) -> (i32, i32) {
    %c0_i32 = arith.constant 0 : i32
    %c0_i32_0 = arith.constant 0 : i32
    %c0_i32_1 = arith.constant 0 : i32
    return %c0_i32, %c0_i32_0 : i32, i32
  }
  func.func @transform_3(%arg0: i32) -> (i32, i32) {
    %c0_i32 = arith.constant 0 : i32
    %c0_i32_0 = arith.constant 0 : i32
    %c0_i32_1 = arith.constant 0 : i32
    return %c0_i32, %c0_i32_0 : i32, i32
  }
  func.func @transform_4(%arg0: i32) -> (i32, i32) {
    %c0_i32 = arith.constant 0 : i32
    %c0_i32_0 = arith.constant 0 : i32
    %c0_i32_1 = arith.constant 0 : i32
    return %c0_i32, %c0_i32_0 : i32, i32
  }
  func.func @transform_5(%arg0: i32) -> (i32, i32) {
    %c0_i32 = arith.constant 0 : i32
    %c0_i32_0 = arith.constant 0 : i32
    %c0_i32_1 = arith.constant 0 : i32
    return %c0_i32, %c0_i32_0 : i32, i32
  }
  func.func @transform_6(%arg0: i32) -> (i32, i32) {
    %c0_i32 = arith.constant 0 : i32
    %c0_i32_0 = arith.constant 0 : i32
    %c0_i32_1 = arith.constant 0 : i32
    return %c0_i32, %c0_i32_0 : i32, i32
  }
  func.func @transform_7(%arg0: i32) -> (i32, i32, i32) {
    %c0_i32 = arith.constant 0 : i32
    %c0_i32_0 = arith.constant 0 : i32
    %c0_i32_1 = arith.constant 0 : i32
    return %arg0, %c0_i32, %c0_i32_0 : i32, i32, i32
  }
}

module attributes {stable_mosaic.version = 11 : i64} {
  func.func @kernel(%arg0: i32, %arg1: memref<1x8x32xf32, #tpu.memory_space<vmem>>, %arg2: memref<1x32xf32, #tpu.memory_space<vmem>>, %arg3: memref<1x32xf32, #tpu.memory_space<vmem>>, %arg4: memref<32x96xbf16, #tpu.memory_space<vmem>>, %arg5: memref<1x96xf32, #tpu.memory_space<vmem>>, %arg6: memref<32x32xbf16, #tpu.memory_space<vmem>>, %arg7: memref<1x32xf32, #tpu.memory_space<vmem>>, %arg8: memref<1x8x32xf32, #tpu.memory_space<vmem>>, %arg9: memref<8x32xbf16, #tpu.memory_space<vmem>>) attributes {dimension_semantics = [#tpu.dimension_semantics<parallel>], iteration_bounds = array<i64: 2>, scalar_prefetch = 0 : i64, scratch_operands = 1 : i64, tpu.core_type = #tpu.core_type<tc>, window_params = [{transform_indices = @transform_0, window_bounds = array<i64: 1, 8, 32>}, {pipeline_mode = #tpu.pipeline_mode<synchronous>, transform_indices = @transform_1, window_bounds = array<i64: 1, 32>}, {pipeline_mode = #tpu.pipeline_mode<synchronous>, transform_indices = @transform_2, window_bounds = array<i64: 1, 32>}, {pipeline_mode = #tpu.pipeline_mode<synchronous>, transform_indices = @transform_3, window_bounds = array<i64: 32, 96>}, {pipeline_mode = #tpu.pipeline_mode<synchronous>, transform_indices = @transform_4, window_bounds = array<i64: 1, 96>}, {pipeline_mode = #tpu.pipeline_mode<synchronous>, transform_indices = @transform_5, window_bounds = array<i64: 32, 32>}, {pipeline_mode = #tpu.pipeline_mode<synchronous>, transform_indices = @transform_6, window_bounds = array<i64: 1, 32>}, {transform_indices = @transform_7, window_bounds = array<i64: 1, 8, 32>}]} {
    %c0 = arith.constant 0 : index
    %c0_0 = arith.constant 0 : index
    %c0_1 = arith.constant 0 : index
    %0 = vector.load %arg1[%c0, %c0_0, %c0_1] : memref<1x8x32xf32, #tpu.memory_space<vmem>>, vector<1x8x32xf32>
    %1 = vector.shape_cast %0 : vector<1x8x32xf32> to vector<8x32xf32>
    %cst = arith.constant dense<0.000000e+00> : vector<8xf32>
    %2 = vector.multi_reduction <add>, %1, %cst [1] : vector<8x32xf32> to vector<8xf32>
    %3 = vector.shape_cast %2 : vector<8xf32> to vector<8x1xf32>
    %cst_2 = arith.constant 3.200000e+01 : f32
    %4 = vector.broadcast %cst_2 : f32 to vector<8x1xf32>
    %5 = arith.divf %3, %4 : vector<8x1xf32>
    %6 = vector.broadcast %5 : vector<8x1xf32> to vector<8x32xf32>
    %7 = arith.subf %1, %6 : vector<8x32xf32>
    %8 = arith.mulf %7, %7 : vector<8x32xf32>
    %cst_3 = arith.constant dense<0.000000e+00> : vector<8xf32>
    %9 = vector.multi_reduction <add>, %8, %cst_3 [1] : vector<8x32xf32> to vector<8xf32>
    %10 = vector.shape_cast %9 : vector<8xf32> to vector<8x1xf32>
    %cst_4 = arith.constant 3.200000e+01 : f32
    %11 = vector.broadcast %cst_4 : f32 to vector<8x1xf32>
    %12 = arith.divf %10, %11 : vector<8x1xf32>
    %13 = vector.broadcast %5 : vector<8x1xf32> to vector<8x32xf32>
    %14 = arith.subf %1, %13 : vector<8x32xf32>
    %cst_5 = arith.constant 9.99999974E-6 : f32
    %15 = vector.broadcast %cst_5 : f32 to vector<8x1xf32>
    %16 = arith.addf %12, %15 : vector<8x1xf32>
    %17 = math.rsqrt %16 : vector<8x1xf32>
    %18 = vector.broadcast %17 : vector<8x1xf32> to vector<8x32xf32>
    %19 = arith.mulf %14, %18 : vector<8x32xf32>
    %c0_6 = arith.constant 0 : index
    %c0_7 = arith.constant 0 : index
    %20 = vector.load %arg2[%c0_6, %c0_7] : memref<1x32xf32, #tpu.memory_space<vmem>>, vector<1x32xf32>
    %21 = vector.broadcast %20 : vector<1x32xf32> to vector<8x32xf32>
    %22 = arith.mulf %19, %21 : vector<8x32xf32>
    %c0_8 = arith.constant 0 : index
    %c0_9 = arith.constant 0 : index
    %23 = vector.load %arg3[%c0_8, %c0_9] : memref<1x32xf32, #tpu.memory_space<vmem>>, vector<1x32xf32>
    %24 = vector.broadcast %23 : vector<1x32xf32> to vector<8x32xf32>
    %25 = arith.addf %22, %24 : vector<8x32xf32>
    %26 = arith.truncf %25 : vector<8x32xf32> to vector<8x32xbf16>
    %c0_10 = arith.constant 0 : index
    %c0_11 = arith.constant 0 : index
    %27 = vector.load %arg4[%c0_10, %c0_11] : memref<32x96xbf16, #tpu.memory_space<vmem>>, vector<32x96xbf16>
    %cst_12 = arith.constant dense<0.000000e+00> : vector<8x96xf32>
    %28 = tpu.matmul %26, %27, %cst_12 {dimension_numbers = #tpu.dot_dimension_numbers<[1], [0], [0], [1], [0, 0, 1, 1], [], []>} : vector<8x32xbf16>, vector<32x96xbf16>, vector<8x96xf32> -> vector<8x96xf32>
    %c0_13 = arith.constant 0 : index
    %c0_14 = arith.constant 0 : index
    %29 = vector.load %arg5[%c0_13, %c0_14] : memref<1x96xf32, #tpu.memory_space<vmem>>, vector<1x96xf32>
    %30 = vector.broadcast %29 : vector<1x96xf32> to vector<8x96xf32>
    %31 = arith.addf %28, %30 : vector<8x96xf32>
    %32 = arith.truncf %31 : vector<8x96xf32> to vector<8x96xbf16>
    %33 = vector.extract_strided_slice %32 {offsets = [0, 0], sizes = [8, 8], strides = [1, 1]} : vector<8x96xbf16> to vector<8x8xbf16>
    %34 = vector.extract_strided_slice %32 {offsets = [0, 32], sizes = [8, 8], strides = [1, 1]} : vector<8x96xbf16> to vector<8x8xbf16>
    %35 = vector.extract_strided_slice %32 {offsets = [0, 64], sizes = [8, 8], strides = [1, 1]} : vector<8x96xbf16> to vector<8x8xbf16>
    %cst_15 = arith.constant dense<0.000000e+00> : vector<8x8xf32>
    %36 = tpu.matmul %33, %34, %cst_15 {dimension_numbers = #tpu.dot_dimension_numbers<[1], [1], [0], [0], [0, 0, 1, 0], [], []>} : vector<8x8xbf16>, vector<8x8xbf16>, vector<8x8xf32> -> vector<8x8xf32>
    %cst_16 = arith.constant dense<0xFF800000> : vector<8xf32>
    %37 = vector.multi_reduction <maximumf>, %36, %cst_16 [1] : vector<8x8xf32> to vector<8xf32>
    %38 = vector.shape_cast %37 : vector<8xf32> to vector<8x1xf32>
    %39 = vector.broadcast %38 : vector<8x1xf32> to vector<8x8xf32>
    %40 = arith.subf %36, %39 : vector<8x8xf32>
    %41 = math.exp %40 : vector<8x8xf32>
    %cst_17 = arith.constant dense<0.000000e+00> : vector<8xf32>
    %42 = vector.multi_reduction <add>, %41, %cst_17 [1] : vector<8x8xf32> to vector<8xf32>
    %43 = vector.shape_cast %42 : vector<8xf32> to vector<8x1xf32>
    %44 = arith.truncf %41 : vector<8x8xf32> to vector<8x8xbf16>
    %cst_18 = arith.constant dense<0.000000e+00> : vector<8x8xf32>
    %45 = tpu.matmul %44, %35, %cst_18 {dimension_numbers = #tpu.dot_dimension_numbers<[1], [0], [0], [1], [0, 0, 1, 1], [], []>} : vector<8x8xbf16>, vector<8x8xbf16>, vector<8x8xf32> -> vector<8x8xf32>
    %46 = tpu.reciprocal %43 {approx = true} : vector<8x1xf32> -> vector<8x1xf32>
    %47 = vector.broadcast %46 : vector<8x1xf32> to vector<8x8xf32>
    %48 = arith.mulf %45, %47 : vector<8x8xf32>
    %49 = arith.truncf %48 : vector<8x8xf32> to vector<8x8xbf16>
    %c0_19 = arith.constant 0 : index
    %c0_20 = arith.constant 0 : index
    %50 = vector.load %arg9[%c0_19, %c0_20] : memref<8x32xbf16, #tpu.memory_space<vmem>>, vector<8x8xbf16>
    tpu.vector_store %arg9[%c0_19, %c0_20], %49 {strides = array<i32>} : memref<8x32xbf16, #tpu.memory_space<vmem>>, vector<8x8xbf16>,
    %51 = vector.extract_strided_slice %32 {offsets = [0, 8], sizes = [8, 8], strides = [1, 1]} : vector<8x96xbf16> to vector<8x8xbf16>
    %52 = vector.extract_strided_slice %32 {offsets = [0, 40], sizes = [8, 8], strides = [1, 1]} : vector<8x96xbf16> to vector<8x8xbf16>
    %53 = vector.extract_strided_slice %32 {offsets = [0, 72], sizes = [8, 8], strides = [1, 1]} : vector<8x96xbf16> to vector<8x8xbf16>
    %cst_21 = arith.constant dense<0.000000e+00> : vector<8x8xf32>
    %54 = tpu.matmul %51, %52, %cst_21 {dimension_numbers = #tpu.dot_dimension_numbers<[1], [1], [0], [0], [0, 0, 1, 0], [], []>} : vector<8x8xbf16>, vector<8x8xbf16>, vector<8x8xf32> -> vector<8x8xf32>
    %cst_22 = arith.constant dense<0xFF800000> : vector<8xf32>
    %55 = vector.multi_reduction <maximumf>, %54, %cst_22 [1] : vector<8x8xf32> to vector<8xf32>
    %56 = vector.shape_cast %55 : vector<8xf32> to vector<8x1xf32>
    %57 = vector.broadcast %56 : vector<8x1xf32> to vector<8x8xf32>
    %58 = arith.subf %54, %57 : vector<8x8xf32>
    %59 = math.exp %58 : vector<8x8xf32>
    %cst_23 = arith.constant dense<0.000000e+00> : vector<8xf32>
    %60 = vector.multi_reduction <add>, %59, %cst_23 [1] : vector<8x8xf32> to vector<8xf32>
    %61 = vector.shape_cast %60 : vector<8xf32> to vector<8x1xf32>
    %62 = arith.truncf %59 : vector<8x8xf32> to vector<8x8xbf16>
    %cst_24 = arith.constant dense<0.000000e+00> : vector<8x8xf32>
    %63 = tpu.matmul %62, %53, %cst_24 {dimension_numbers = #tpu.dot_dimension_numbers<[1], [0], [0], [1], [0, 0, 1, 1], [], []>} : vector<8x8xbf16>, vector<8x8xbf16>, vector<8x8xf32> -> vector<8x8xf32>
    %64 = tpu.reciprocal %61 {approx = true} : vector<8x1xf32> -> vector<8x1xf32>
    %65 = vector.broadcast %64 : vector<8x1xf32> to vector<8x8xf32>
    %66 = arith.mulf %63, %65 : vector<8x8xf32>
    %67 = arith.truncf %66 : vector<8x8xf32> to vector<8x8xbf16>
    %c0_25 = arith.constant 0 : index
    %c8 = arith.constant 8 : index
    %68 = vector.load %arg9[%c0_25, %c8] : memref<8x32xbf16, #tpu.memory_space<vmem>>, vector<8x8xbf16>
    tpu.vector_store %arg9[%c0_25, %c8], %67 {strides = array<i32>} : memref<8x32xbf16, #tpu.memory_space<vmem>>, vector<8x8xbf16>,
    %69 = vector.extract_strided_slice %32 {offsets = [0, 16], sizes = [8, 8], strides = [1, 1]} : vector<8x96xbf16> to vector<8x8xbf16>
    %70 = vector.extract_strided_slice %32 {offsets = [0, 48], sizes = [8, 8], strides = [1, 1]} : vector<8x96xbf16> to vector<8x8xbf16>
    %71 = vector.extract_strided_slice %32 {offsets = [0, 80], sizes = [8, 8], strides = [1, 1]} : vector<8x96xbf16> to vector<8x8xbf16>
    %cst_26 = arith.constant dense<0.000000e+00> : vector<8x8xf32>
    %72 = tpu.matmul %69, %70, %cst_26 {dimension_numbers = #tpu.dot_dimension_numbers<[1], [1], [0], [0], [0, 0, 1, 0], [], []>} : vector<8x8xbf16>, vector<8x8xbf16>, vector<8x8xf32> -> vector<8x8xf32>
    %cst_27 = arith.constant dense<0xFF800000> : vector<8xf32>
    %73 = vector.multi_reduction <maximumf>, %72, %cst_27 [1] : vector<8x8xf32> to vector<8xf32>
    %74 = vector.shape_cast %73 : vector<8xf32> to vector<8x1xf32>
    %75 = vector.broadcast %74 : vector<8x1xf32> to vector<8x8xf32>
    %76 = arith.subf %72, %75 : vector<8x8xf32>
    %77 = math.exp %76 : vector<8x8xf32>
    %cst_28 = arith.constant dense<0.000000e+00> : vector<8xf32>
    %78 = vector.multi_reduction <add>, %77, %cst_28 [1] : vector<8x8xf32> to vector<8xf32>
    %79 = vector.shape_cast %78 : vector<8xf32> to vector<8x1xf32>
    %80 = arith.truncf %77 : vector<8x8xf32> to vector<8x8xbf16>
    %cst_29 = arith.constant dense<0.000000e+00> : vector<8x8xf32>
    %81 = tpu.matmul %80, %71, %cst_29 {dimension_numbers = #tpu.dot_dimension_numbers<[1], [0], [0], [1], [0, 0, 1, 1], [], []>} : vector<8x8xbf16>, vector<8x8xbf16>, vector<8x8xf32> -> vector<8x8xf32>
    %82 = tpu.reciprocal %79 {approx = true} : vector<8x1xf32> -> vector<8x1xf32>
    %83 = vector.broadcast %82 : vector<8x1xf32> to vector<8x8xf32>
    %84 = arith.mulf %81, %83 : vector<8x8xf32>
    %85 = arith.truncf %84 : vector<8x8xf32> to vector<8x8xbf16>
    %c0_30 = arith.constant 0 : index
    %c16 = arith.constant 16 : index
    %86 = vector.load %arg9[%c0_30, %c16] : memref<8x32xbf16, #tpu.memory_space<vmem>>, vector<8x8xbf16>
    tpu.vector_store %arg9[%c0_30, %c16], %85 {strides = array<i32>} : memref<8x32xbf16, #tpu.memory_space<vmem>>, vector<8x8xbf16>,
    %87 = vector.extract_strided_slice %32 {offsets = [0, 24], sizes = [8, 8], strides = [1, 1]} : vector<8x96xbf16> to vector<8x8xbf16>
    %88 = vector.extract_strided_slice %32 {offsets = [0, 56], sizes = [8, 8], strides = [1, 1]} : vector<8x96xbf16> to vector<8x8xbf16>
    %89 = vector.extract_strided_slice %32 {offsets = [0, 88], sizes = [8, 8], strides = [1, 1]} : vector<8x96xbf16> to vector<8x8xbf16>
    %cst_31 = arith.constant dense<0.000000e+00> : vector<8x8xf32>
    %90 = tpu.matmul %87, %88, %cst_31 {dimension_numbers = #tpu.dot_dimension_numbers<[1], [1], [0], [0], [0, 0, 1, 0], [], []>} : vector<8x8xbf16>, vector<8x8xbf16>, vector<8x8xf32> -> vector<8x8xf32>
    %cst_32 = arith.constant dense<0xFF800000> : vector<8xf32>
    %91 = vector.multi_reduction <maximumf>, %90, %cst_32 [1] : vector<8x8xf32> to vector<8xf32>
    %92 = vector.shape_cast %91 : vector<8xf32> to vector<8x1xf32>
    %93 = vector.broadcast %92 : vector<8x1xf32> to vector<8x8xf32>
    %94 = arith.subf %90, %93 : vector<8x8xf32>
    %95 = math.exp %94 : vector<8x8xf32>
    %cst_33 = arith.constant dense<0.000000e+00> : vector<8xf32>
    %96 = vector.multi_reduction <add>, %95, %cst_33 [1] : vector<8x8xf32> to vector<8xf32>
    %97 = vector.shape_cast %96 : vector<8xf32> to vector<8x1xf32>
    %98 = arith.truncf %95 : vector<8x8xf32> to vector<8x8xbf16>
    %cst_34 = arith.constant dense<0.000000e+00> : vector<8x8xf32>
    %99 = tpu.matmul %98, %89, %cst_34 {dimension_numbers = #tpu.dot_dimension_numbers<[1], [0], [0], [1], [0, 0, 1, 1], [], []>} : vector<8x8xbf16>, vector<8x8xbf16>, vector<8x8xf32> -> vector<8x8xf32>
    %100 = tpu.reciprocal %97 {approx = true} : vector<8x1xf32> -> vector<8x1xf32>
    %101 = vector.broadcast %100 : vector<8x1xf32> to vector<8x8xf32>
    %102 = arith.mulf %99, %101 : vector<8x8xf32>
    %103 = arith.truncf %102 : vector<8x8xf32> to vector<8x8xbf16>
    %c0_35 = arith.constant 0 : index
    %c24 = arith.constant 24 : index
    %104 = vector.load %arg9[%c0_35, %c24] : memref<8x32xbf16, #tpu.memory_space<vmem>>, vector<8x8xbf16>
    tpu.vector_store %arg9[%c0_35, %c24], %103 {strides = array<i32>} : memref<8x32xbf16, #tpu.memory_space<vmem>>, vector<8x8xbf16>,
    %c0_36 = arith.constant 0 : index
    %c0_37 = arith.constant 0 : index
    %105 = vector.load %arg9[%c0_36, %c0_37] : memref<8x32xbf16, #tpu.memory_space<vmem>>, vector<8x32xbf16>
    %c0_38 = arith.constant 0 : index
    %c0_39 = arith.constant 0 : index
    %106 = vector.load %arg6[%c0_38, %c0_39] : memref<32x32xbf16, #tpu.memory_space<vmem>>, vector<32x32xbf16>
    %cst_40 = arith.constant dense<0.000000e+00> : vector<8x32xf32>
    %107 = tpu.matmul %105, %106, %cst_40 {dimension_numbers = #tpu.dot_dimension_numbers<[1], [0], [0], [1], [0, 0, 1, 1], [], []>} : vector<8x32xbf16>, vector<32x32xbf16>, vector<8x32xf32> -> vector<8x32xf32>
    %c0_41 = arith.constant 0 : index
    %c0_42 = arith.constant 0 : index
    %108 = vector.load %arg7[%c0_41, %c0_42] : memref<1x32xf32, #tpu.memory_space<vmem>>, vector<1x32xf32>
    %109 = vector.broadcast %108 : vector<1x32xf32> to vector<8x32xf32>
    %110 = arith.addf %107, %109 : vector<8x32xf32>
    %111 = arith.addf %1, %110 : vector<8x32xf32>
    %c0_43 = arith.constant 0 : index
    %c0_44 = arith.constant 0 : index
    %c0_45 = arith.constant 0 : index
    %112 = vector.load %arg8[%c0_43, %c0_44, %c0_45] : memref<1x8x32xf32, #tpu.memory_space<vmem>>, vector<1x8x32xf32>
    %113 = vector.shape_cast %112 : vector<1x8x32xf32> to vector<8x32xf32>
    %114 = vector.shape_cast %111 : vector<8x32xf32> to vector<1x8x32xf32>
    tpu.vector_store %arg8[%c0_43, %c0_44, %c0_45], %114 {strides = array<i32>} : memref<1x8x32xf32, #tpu.memory_space<vmem>>, vector<1x8x32xf32>,
    return
  }
  func.func @transform_0(%arg0: i32) -> (i32, i32, i32) {
    %c0_i32 = arith.constant 0 : i32
    %c0_i32_0 = arith.constant 0 : i32
    %c0_i32_1 = arith.constant 0 : i32
    return %arg0, %c0_i32, %c0_i32_0 : i32, i32, i32
  }
  func.func @transform_1(%arg0: i32) -> (i32, i32) {
    %c0_i32 = arith.constant 0 : i32
    %c0_i32_0 = arith.constant 0 : i32
    %c0_i32_1 = arith.constant 0 : i32
    return %c0_i32, %c0_i32_0 : i32, i32
  }
  func.func @transform_2(%arg0: i32) -> (i32, i32) {
    %c0_i32 = arith.constant 0 : i32
    %c0_i32_0 = arith.constant 0 : i32
    %c0_i32_1 = arith.constant 0 : i32
    return %c0_i32, %c0_i32_0 : i32, i32
  }
  func.func @transform_3(%arg0: i32) -> (i32, i32) {
    %c0_i32 = arith.constant 0 : i32
    %c0_i32_0 = arith.constant 0 : i32
    %c0_i32_1 = arith.constant 0 : i32
    return %c0_i32, %c0_i32_0 : i32, i32
  }
  func.func @transform_4(%arg0: i32) -> (i32, i32) {
    %c0_i32 = arith.constant 0 : i32
    %c0_i32_0 = arith.constant 0 : i32
    %c0_i32_1 = arith.constant 0 : i32
    return %c0_i32, %c0_i32_0 : i32, i32
  }
  func.func @transform_5(%arg0: i32) -> (i32, i32) {
    %c0_i32 = arith.constant 0 : i32
    %c0_i32_0 = arith.constant 0 : i32
    %c0_i32_1 = arith.constant 0 : i32
    return %c0_i32, %c0_i32_0 : i32, i32
  }
  func.func @transform_6(%arg0: i32) -> (i32, i32) {
    %c0_i32 = arith.constant 0 : i32
    %c0_i32_0 = arith.constant 0 : i32
    %c0_i32_1 = arith.constant 0 : i32
    return %c0_i32, %c0_i32_0 : i32, i32
  }
  func.func @transform_7(%arg0: i32) -> (i32, i32, i32) {
    %c0_i32 = arith.constant 0 : i32
    %c0_i32_0 = arith.constant 0 : i32
    %c0_i32_1 = arith.constant 0 : i32
    return %arg0, %c0_i32, %c0_i32_0 : i32, i32, i32
  }
}

</mosaic_0001>

<bundles_post_ra>
// kernel: tpu_custom_call.1
= control target key start
LH: loop header
LB: loop body
LE: loop exit
PB: predicated region body
PF: predicated region fallthrough
CT: control target
= control target key end

     0   :  { %s1785_s0 = inlined_call_operand.hbm [shape: f32[2,8,32], index: 0, kind: input, shape index: {}]   ;;  %s1786_s1 = inlined_call_operand.vmem [shape: f32[1,32], index: 1, kind: input, shape index: {}]   ;;  %s1787_s2 = inlined_call_operand.vmem [shape: f32[1,32], index: 2, kind: input, shape index: {}]   ;;  %s1788_s3 = inlined_call_operand.hbm [shape: bf16[32,96], index: 3, kind: input, shape index: {}]   ;;  %s1789_s4 = inlined_call_operand.vmem [shape: f32[1,96], index: 4, kind: input, shape index: {}]   ;;  %s1790_s5 = inlined_call_operand.hbm [shape: bf16[32,32], index: 5, kind: input, shape index: {}]   ;;  %s1791_s6 = inlined_call_operand.vmem [shape: f32[1,32], index: 6, kind: input, shape index: {}]   ;;  %s1792_s7 = inlined_call_operand.hbm [shape: f32[2,8,32], index: 7, kind: output, shape index: {}]  }
   0x1   :  { %1797 = sst [smem:[#allocation13_spill]] %s1788_s3 }
   0x2   :  { %1798 = sst [smem:[#allocation14_spill]] %s1790_s5 }
   0x3   :  { %12 = vsyncpa [#allocation4], 0 }
   0x4   :  { %14 = vsyncpa [#allocation4 + $0x1], 0 }
   0x5   :  { %15 = vsyncpa [#allocation7], 0 }
   0x6   :  { %16 = vsyncpa [#allocation5], 0 }
   0x7   :  { %18 = vsyncpa [#allocation5 + $0x1], 0  ;;  %s1512_s24 = smov 0   ;;  %s1514_s25 = smov 0  }
   0x8   :  { %s1516_s26 = smov 0   ;;  %s1518_s27 = smov 0  }
   0x9 LB: > { %s1533_s28 = sadd.s32 4294967295, %s1448_s27   ;;  %s1067_s29 = sadd.s32 4294967294, %s1448_s27   ;;  %s1448_s27 = sphi %s1518_s27, %s1818_s27   ;;  %s1444_s26 = sphi %s1516_s26, %s1817_s26   ;;  %s1440_s25 = sphi %s1514_s25, %s1816_s25   ;;  %s1436_s24 = sphi %s1512_s24, %s1815_s24  }
   0xa   : > { %p44_p0 = scmp.ne.s32.totalorder %s1440_s25, %s1436_s24  ;;  %p1793_p1 = scmp.eq.s32.totalorder %s1533_s28, 0 }
   0xb   : > { %p200_p3 = scmp.eq.s32.totalorder %s1067_s29, 1  ;;  %p1068_p5 = scmp.ge.s32.totalorder %s1448_s27, 1 }
   0xc   : > { %p1542_p4 = por %p1793_p1, %p44_p0  ;;  %p207_p7 = scmp.lt.s32.totalorder %s1448_s27, 3 }
   0xd   : > { %p1547_p6 = por %p200_p3, %p44_p0  ;;  %s1450_s10 = smov [#allocation6]  }
   0xe   : > { %s1799_s30 = scalar_select %p1542_p4, 1, 0 }
   0xf   : > { %s1800_s8 = scalar_select %p1547_p6, 1, 0 }
  0x10   : > { %p1552_p8 = pnand %p1068_p5, %p207_p7  ;;  %s225_s11 = sshll.u32 %s1450_s10, 4  ;;  %s226_s11 = int_to_ptr.vmem [resolvable:$true] %s225_s11 }
  0x11   : > { %s1451_s13 = smov [#allocation8]   ;;  %s1311_s15 = scalar_lea.vmem %s226_s11, 256 }
  0x12   : > { %s1801_s9 = scalar_select %p1552_p8, 1, 0 }
  0x13   : > { %p1205_p9 = pneg %p1552_p8  ;;  %s241_s14 = sshll.u32 %s1451_s13, 4  ;;  %s242_s14 = int_to_ptr.vmem [resolvable:$true] %s241_s14 }
  0x14   : > { %p1312_p13 = scmp.ne.s32.totalorder %s226_s11, %s1311_s15  ;;  %p1319_p5 = scmp.lt.s32.totalorder %s226_s11, %s226_s11 }
  0x15   : > { %p1561_p11 = pnand %p1205_p9, %p1793_p1  ;;  %p1320_p7 = scmp.lt.s32.totalorder %s1311_s15, %s1311_s15 }
  0x17   : > { %p1302_p12 = pneg %p1561_p11  ;;  %p1321_p10 = por %p1320_p7, %p1319_p5 }
  0x19   : > { %p1314_p0 = pnand %p1312_p13, %p1302_p12 }
  0x1b   : > { %p1315_p3 = pneg %p1314_p0 }
  0x1d   : > { %p1322_p9 = pnand %p1321_p10, %p1315_p3 }
  0x1f   : > { %1325 = shalt.err (!%p1322_p9)
}
  0x20   : > { %s1452_s16 = smov 64   ;;  %s1453_s17 = smov 4  }
  0x21   : > { %s1803_s3 = sld [smem:[#allocation13_spill]]  ;;  %s1337_s20 = scalar_lea.vmem %s242_s14, 256 }
  0x22   : > { %p1338_p1 = scmp.ne.s32.totalorder %s242_s14, %s1337_s20  ;;  %p1345_p2 = scmp.lt.s32.totalorder %s242_s14, %s242_s14 }
  0x23   : > { %p1346_p6 = scmp.lt.s32.totalorder %s1337_s20, %s1337_s20 }
  0x24   : > { %p1340_p13 = pnand %p1338_p1, %p1302_p12 }
  0x25   : > { %p1347_p5 = por %p1346_p6, %p1345_p2 }
  0x26   : > { %p1341_p0 = pneg %p1340_p13 }
  0x27   : > { %1208 = dma.hbm_to_vmem [thread:$0]  (!%p1561_p11), %s1803_s3, 256, %s226_s11, [#allocation7], %s1452_s16, %s1452_s16, %s1453_s17  }
  0x28   : > { %p1348_p10 = pnand %p1347_p5, %p1341_p0 }
  0x2a   : > { %1351 = shalt.err (!%p1348_p10)
}
  0x2b   : > { %s1804_s5 = sld [smem:[#allocation14_spill]]  ;;  %s1584_s23 = sadd.s32 1, %s1448_s27  }
  0x2c   : > { %s31_s29 = sadd.s32 1, %s1444_s26  ;;  %s28_s10 = ssub.s32 %s1448_s27, %s1584_s23 }
  0x2d   : > { %p38_p1 = scmp.ne.s32.totalorder %s1444_s26, %s1440_s25  ;;  %p29_p2 = scmp.eq.s32.totalorder %s28_s10, 0 }
  0x2e   : > { %p39_p6 = scmp.eq.s32.totalorder %s1448_s27, 0  ;;  %p1805_p12 = scmp.eq.s32.totalorder %s1533_s28, 1 }
  0x2f   : > { %p1222_p7 = scmp.lt.s32.totalorder %s1448_s27, 2  ;;  %s258_s13 = sand.u32 1, %s1444_s26  }
  0x30   : > { %p1594_p3 = por %p1805_p12, %p38_p1  ;;  %p40_p9 = por %p39_p6, %p38_p1 }
  0x31   : > { %1211 = dma.hbm_to_vmem [thread:$0]  (!%p1561_p11), %s1804_s5, 256, %s242_s14, [#allocation7], %s1452_s16, %s1452_s16, %s1453_s17  }
  0x32   : > { %s1806_s11 = scalar_select %p1594_p3, 1, 0 }
  0x33   : > { %s1600_s12 = scalar_select %p29_p2, %s1444_s26, %s31_s29  }
  0x34   : > { %s1072_s15 = sshll.u32 %s258_s13, 3  ;;  %s1073_s14 = sshll.u32 %s1448_s27, 7 }
  0x35   : > { %s1607_s18 = scalar_lea.hbm %s1785_s0, %s1073_s14  ;;  %s262_s19 = scalar_lea.vmem [#allocation3], %s1072_s15 }
  0x36   : > { %s269_s20 = sshll.u32 %s262_s19, 4  ;;  %p1609_p11 = pnand %p1222_p7, %p40_p9  ;;  %s270_s20 = int_to_ptr.vmem [resolvable:$true] %s269_s20 }
  0x37   : > { %s259_s22 = scalar_lea.sflag [#allocation4], %s258_s13  ;;  %s1352_s29 = scalar_lea.hbm %s1607_s18, 128 }
  0x38   : > { %p1353_p13 = scmp.ne.s32.totalorder %s1607_s18, %s1352_s29  ;;  %p1354_p0 = pneg %p1609_p11 }
  0x39   : > { %s1357_s16 = scalar_lea.hbm %s1785_s0, 256  ;;  %p1358_p1 = scmp.lt.s32.totalorder %s1607_s18, %s1785_s0 }
  0x3a   : > { %p1355_p5 = pnand %p1354_p0, %p1353_p13  ;;  %p1359_p2 = scmp.lt.s32.totalorder %s1357_s16, %s1352_s29 }
  0x3c   : > { %p1356_p10 = pneg %p1355_p5  ;;  %p1360_p6 = por %p1359_p2, %p1358_p1 }
  0x3e   : > { %p1361_p12 = pnand %p1360_p6, %p1356_p10 }
  0x40   : > { %1364 = shalt.err (!%p1361_p12)
}
  0x41   : > { %s1365_s19 = scalar_lea.vmem %s270_s20, 128  ;;  %s1454_s13 = smov [#allocation3]  }
  0x42   : > { %p1366_p7 = scmp.ne.s32.totalorder %s270_s20, %s1365_s19  ;;  %s1370_s3 = sshll.u32 %s1454_s13, 4  ;;  %s1371_s3 = int_to_ptr.vmem [resolvable:$false] %s1370_s3 }
  0x43   : > { %s1372_s5 = scalar_lea.vmem %s1371_s3, 256  ;;  %p1373_p13 = scmp.lt.s32.totalorder %s270_s20, %s1371_s3 }
  0x44   : > { %p1368_p9 = pnand %p1366_p7, %p1354_p0  ;;  %p1374_p5 = scmp.lt.s32.totalorder %s1372_s5, %s1365_s19 }
  0x46   : > { %p1369_p3 = pneg %p1368_p9  ;;  %p1375_p4 = por %p1374_p5, %p1373_p13 }
  0x48   : > { %p1376_p8 = pnand %p1375_p4, %p1369_p3 }
  0x4a   : > { %1379 = shalt.err (!%p1376_p8)
}
  0x4b   : > { %1215 = dma.hbm_to_vmem [thread:$0]  (!%p1609_p11), %s1607_s18, 128, %s270_s20, %s259_s22  }
  0x4c   : > { %p1808_p10 = scmp.ne.s32.totalorder %s1801_s9, 0 }
  0x4d   : > { %s1630_s29 = sand.u32 (!%p1808_p10), 1, %s1440_s25   ;;  %p1809_p4 = scmp.ne.s32.totalorder (!%p1808_p10), %s1799_s30, 0 }
  0x4e   : > { %278 = sbr.rel (%p1808_p10) target bundleno = 1662 (0x67e), region = 48  ;;  %s1075_s10 = sshll.u32 (!%p1808_p10), %s1630_s29, 3 }
  0x4f   : > { %s281_s3 = scalar_lea.sflag (!%p1808_p10), [#allocation4], %s1630_s29  ;;  %s284_s5 = scalar_lea.vmem (!%p1808_p10), [#allocation3], %s1075_s10 }
  0x53   : > { %1423 = dma.done.wait (%p1809_p4), %s281_s3, 128  }
  0x54   : > { %1425 = vsyncadd (%p1809_p4), %s281_s3, 4294967168  ;;  %p1810_p8 = scmp.eq.s32.totalorder %s1533_s28, 0 }
  0x56   : > { %1427 = dma.done.wait (%p1810_p8), [#allocation7], 512   ;;  %p1811_p3 = pmov %p1810_p8 }
  0x57   : > { %vm325_vm0 = vcmask 261120   ;;  %v1644_v0 = vld [vmem:[%s284_s5] sm:$0xff]  ;;  %v1278_v7 = vld [vmem:[#allocation6 + $0x8] sm:$0xff]   ;;  %v1455_v8 = vmov 0.0   ;;  %vm1456_vm1 = vmmov 0   ;;  %v1279_v9 = vld [vmem:[#allocation6] sm:$0xff]  }
  0x58   : > { %1429 = vsyncadd (%p1811_p3), [#allocation7], 4294966784  ;;  %v326_v1 = vsel %vm325_vm0, %v1644_v0, 0.0  ;;  %1129 = vmatprep.subr.bf16.mxu0 %v1455_v8  ;;  %1133 = vmatprep.mubr.msk.bf16.mxu0 %vm1456_vm1, %v1455_v8  ;;  %v1079_v14 = vld [vmem:[%s1786_s1] ss:$0 sm:$0xff]  ;;  %s1457_s14 = smov 120  }
  0x59   : > { %327 = vadd.xlane.f32.xlu0 %v326_v1  ;;  %1130 = vmatpush3.bf16.msra.mxu0 %v1278_v7  ;;  %v1080_v16 = vld [vmem:[%s1787_s2] ss:$0 sm:$0xff]  ;;  %s1458_s16 = smov 96   ;;  %s1459_s17 = smov 88   ;;  %vm427_vm2 = vcmask 64512   ;;  %vm489_vm3 = vcmask 1043456  }
  0x5a   : > { %1137 = vmatprep.subr.bf16.mxu1 %v1455_v8  ;;  %1131 = vmatprep.subr.bf16.mxu0 %v1455_v8  ;;  %v1081_v20 = vld [vmem:[%s1789_s4] ss:$0 sm:$0xff]  ;;  %s1460_s15 = smov 80   ;;  %s1461_s19 = smov 112   ;;  %vm536_vm4 = vcmask 60416   ;;  %vm655_vm5 = vcmask 126016  }
  0x5b   : > { %1139 = vmatprep.mubr.msk.bf16.mxu1 %vm1456_vm1, %v1455_v8  ;;  %s1462_s13 = smov 72   ;;  %s1463_s3 = smov 104   ;;  %vm774_vm6 = vcmask 191616   ;;  %vm893_vm7 = vcmask 257216  }
  0x5c   : > { %s1464_s5 = smov 64   ;;  %s1465_s30 = smov 56  }
  0x5d   : > { %1132 = vmatpush3.bf16.msra.mxu0 %v1279_v9  ;;  %s1466_s9 = smov 48   ;;  %s1467_s18 = smov 40  }
  0x5e   : > { %1143 = vmatprep.subr.bf16.mxu0 %v1455_v8  ;;  %s1468_s20 = smov 8   ;;  %s1469_s21 = smov 16  }
  0x5f   : > { %s1470_s22 = smov 24   ;;  %p1812_p0 = scmp.ne.s32.totalorder %s1806_s11, 0 }
  0xe2   : > { %v328_v2 = vpop.xlane.xlu0 %327 }
  0xe3   : > { %v330_v3 = vmul.f32 0.03125, %v328_v2 }
  0xe5   : > { %v331_v4 = vsub.f32 %v1644_v0, %v330_v3 }
  0xe7   : > { %v332_v5 = vmul.f32 %v331_v4, %v331_v4 }
  0xe9   : > { %v333_v6 = vsel %vm325_vm0, %v332_v5, 0.0 }
  0xea   : > { %334 = vadd.xlane.f32.xlu0 %v333_v6 }
 0x173   : > { %v335_v10 = vpop.xlane.xlu0 %334 }
 0x174   : > { %v336_v11 = vmul.f32 0.03125, %v335_v10 }
 0x176   : > { %v337_v12 = vadd.f32 1e-05, %v336_v11 }
 0x178   : > { %1282 = vrsqrt.f32 %v337_v12 }
 0x185   : > { %v1283_v13 = vpop.eup %1282 }
 0x186   : > { %v339_v15 = vmul.f32 %v1283_v13, %v331_v4 }
 0x188   : > { %v347_v17 = vmul.f32 %v1079_v14, %v339_v15 }
 0x18a   : > { %v355_v18 = vadd.f32 %v1080_v16, %v347_v17 }
 0x18c   : > { %v356_v19 = vpack.c.bf16 %v355_v18, %v355_v18 }
 0x18e   : > { %1134 = vmatmul.mubr.msk.bf16.vlgmr.msra.gmra.mxu0 %vm325_vm0, %v356_v19 }
 0x18f   : > { %1145 = vmatprep.mubr.msk.bf16.mxu0 %vm1456_vm1, %v1455_v8 }
 0x24e   : > { %v417_v21 = vpop.f32.mrf.mxu0 }
 0x24f   : > { %v418_v22 = vadd.f32 %v1081_v20, %v417_v21 }
 0x250   : > { %v1135_v23 = vpop.f32.mrf.mxu0 }
 0x251   : > { %v1670_v24 = vpack.c.bf16 %v418_v22, %v418_v22 }
 0x252   : > { %v420_v25 = vpop.f32.mrf.mxu0 }
 0x253   : > { %538 = vrot.lane.b32.xlu0 %v1670_v24, %s1457_s14  ;;  %425 = vrot.lane.b32.xlu1 %v1670_v24, %s1458_s16 }
 0x254   : > { %v1136_v26 = vpop.f32.mrf.mxu0 }
 0x257   : > { %540 = vrot.lane.b32.xlu1 %v1670_v24, %s1459_s17  ;;  %s1101_s17 = sshll.u32 %s1533_s28, 7  ;;  %s965_s28 = scalar_lea.sflag [#allocation5], %s1630_s29 }
 0x25b   : > { %659 = vrot.lane.b32.xlu1 %v1670_v24, %s1460_s15  ;;  %s322_s15 = scalar_lea.vmem [#allocation9], %s1075_s10 }
 0x25f   : > { %657 = vrot.lane.b32.xlu1 %v1670_v24, %s1461_s19  ;;  %s978_s19 = sshll.u32 %s322_s15, 4  ;;  %s1743_s19 = int_to_ptr.vmem [resolvable:$true] %s978_s19 }
 0x260   : > { %s1380_s10 = scalar_lea.vmem %s1743_s19, 128 }
 0x261   : > { %p1381_p11 = scmp.ne.s32.totalorder %s1743_s19, %s1380_s10 }
 0x263   : > { %778 = vrot.lane.b32.xlu1 %v1670_v24, %s1462_s13  ;;  %p1382_p1 = pnand %p1381_p11, %p1812_p0 }
 0x265   : > { %p1383_p2 = pneg %p1382_p1 }
 0x267   : > { %776 = vrot.lane.b32.xlu1 %v1670_v24, %s1463_s3 }
 0x2c5   : > { %v426_v27 = vpop.permute.xlu1 %425  ;;  %v539_v32 = vpop.permute.xlu0 %538 }
 0x2c6   : > { %v432_v28 = vsel %vm427_vm2, %v426_v27, 0 }
 0x2c7   : > { %1138 = vmatpush3.bf16.xpose.msra.mxu1 %v432_v28 }
 0x2c8   : > { %1149 = vmatprep.subr.bf16.mxu1 %v1455_v8 }
 0x2c9   : > { %v541_v29 = vpop.permute.xlu1 %540 }
 0x2ca   : > { %v546_v30 = vsel %vm427_vm2, %v541_v29, 0 }
 0x2cd   : > { %v660_v31 = vpop.permute.xlu1 %659 }
 0x2ce   : > { %1140 = vmatmul.mubr.msk.bf16.vlgmr.msra.gmra.mxu1 %vm427_vm2, %v1670_v24  ;;  %v665_v34 = vsel %vm427_vm2, %v660_v31, 0 }
 0x2cf   : > { %1150 = vmatpush3.bf16.xpose.msra.mxu1 %v546_v30  ;;  %1151 = vmatprep.mubr.msk.bf16.mxu1 %vm1456_vm1, %v1455_v8 }
 0x2d0   : > { %1161 = vmatprep.subr.bf16.mxu1 %v1455_v8 }
 0x2d1   : > { %v658_v33 = vpop.permute.xlu1 %657 }
 0x2d5   : > { %v779_v35 = vpop.permute.xlu1 %778 }
 0x2d6   : > { %1152 = vmatmul.mubr.msk.bf16.vlgmr.msra.gmra.mxu1 %vm427_vm2, %v539_v32  ;;  %v784_v36 = vsel %vm427_vm2, %v779_v35, 0 }
 0x2d7   : > { %1162 = vmatpush3.bf16.xpose.msra.mxu1 %v665_v34  ;;  %1163 = vmatprep.mubr.msk.bf16.mxu1 %vm1456_vm1, %v1455_v8 }
 0x2d8   : > { %1173 = vmatprep.subr.bf16.mxu1 %v1455_v8 }
 0x2d9   : > { %v777_v37 = vpop.permute.xlu1 %776 }
 0x2de   : > { %1164 = vmatmul.mubr.msk.bf16.vlgmr.msra.gmra.mxu1 %vm427_vm2, %v658_v33 }
 0x2df   : > { %1174 = vmatpush3.bf16.xpose.msra.mxu1 %v784_v36  ;;  %1175 = vmatprep.mubr.msk.bf16.mxu1 %vm1456_vm1, %v1455_v8 }
 0x2e0   : > { %1185 = vmatprep.subr.bf16.mxu1 %v1455_v8 }
 0x2e6   : > { %1176 = vmatmul.mubr.msk.bf16.vlgmr.msra.gmra.mxu1 %vm427_vm2, %v777_v37 }
 0x2e7   : > { %1189 = vmatprep.mubr.msk.bf16.mxu1 %vm1456_vm1, %v1455_v8 }
 0x38e   : > { %v468_v38 = vpop.f32.mrf.mxu1 }
 0x38f   : > { %v474_v39 = vsel %vm427_vm2, %v468_v38, -inf }
 0x390   : > { %475 = vmax.xlane.f32.xlu1 %v474_v39  ;;  %v1141_v40 = vpop.f32.mrf.mxu1 }
 0x392   : > { %v471_v41 = vpop.f32.mrf.mxu1 }
 0x394   : > { %v1142_v42 = vpop.f32.mrf.mxu1 }
 0x396   : > { %v582_v43 = vpop.f32.mrf.mxu1 }
 0x397   : > { %v588_v44 = vsel %vm427_vm2, %v582_v43, -inf }
 0x398   : > { %589 = vmax.xlane.f32.xlu0 %v588_v44  ;;  %v1153_v45 = vpop.f32.mrf.mxu1 }
 0x39a   : > { %v585_v46 = vpop.f32.mrf.mxu1 }
 0x39c   : > { %v1154_v47 = vpop.f32.mrf.mxu1 }
 0x39e   : > { %v701_v48 = vpop.f32.mrf.mxu1 }
 0x39f   : > { %v707_v57 = vsel %vm427_vm2, %v701_v48, -inf }
 0x3a0   : > { %v1165_v49 = vpop.f32.mrf.mxu1 }
 0x3a1   : > { %484 = vrot.lane.b32.xlu1 %v1670_v24, %s1464_s5  ;;  %s1741_s5 = scalar_lea.hbm %s1792_s7, %s1101_s17 }
 0x3a2   : > { %v704_v50 = vpop.f32.mrf.mxu1 }
 0x3a4   : > { %v1166_v51 = vpop.f32.mrf.mxu1 }
 0x3a5   : > { %v1281_v51 = vld [vmem:[#allocation8] sm:$0xff]  }
 0x3a6   : > { %v820_v52 = vpop.f32.mrf.mxu1 }
 0x3a7   : > { %v826_v53 = vsel %vm427_vm2, %v820_v52, -inf }
 0x3a8   : > { %827 = vmax.xlane.f32.xlu0 %v826_v53  ;;  %v1177_v54 = vpop.f32.mrf.mxu1 }
 0x3aa   : > { %v823_v55 = vpop.f32.mrf.mxu1 }
 0x3ac   : > { %v1178_v56 = vpop.f32.mrf.mxu1 }
 0x3be   : > { %598 = vrot.lane.b32.xlu0 %v1670_v24, %s1465_s30  ;;  %s1471_s30 = smov [#allocation9]  }
 0x3c5   : > { %708 = vmax.xlane.f32.xlu1 %v707_v57 }
 0x3d6   : > { %717 = vrot.lane.b32.xlu1 %v1670_v24, %s1466_s9  ;;  %s1384_s9 = sshll.u32 %s1471_s30, 4  ;;  %s1385_s9 = int_to_ptr.vmem [resolvable:$false] %s1384_s9 }
 0x3d7   : > { %p1387_p6 = scmp.lt.s32.totalorder %s1743_s19, %s1385_s9 }
 0x3da   : > { %836 = vrot.lane.b32.xlu1 %v1670_v24, %s1467_s18  ;;  %s1386_s18 = scalar_lea.vmem %s1385_s9, 256 }
 0x3db   : > { %p1388_p12 = scmp.lt.s32.totalorder %s1386_s18, %s1380_s10 }
 0x3dd   : > { %p1389_p7 = por %p1388_p12, %p1387_p6 }
 0x3df   : > { %p1390_p9 = pnand %p1389_p7, %p1383_p2 }
 0x419   : > { %v476_v58 = vpop.xlane.xlu1 %475 }
 0x41a   : > { %v477_v59 = vsub.f32 %v468_v38, %v476_v58 }
 0x41c   : > { %v478_v60 = vmul.f32 1.442695, %v477_v59 }
 0x41d   : > { %v485_v61 = vpop.permute.xlu1 %484 }
 0x41e   : > { %1284 = vpow2.f32 %v478_v60  ;;  %v491_v62 = vsel %vm489_vm3, %v485_v61, 0 }
 0x41f   : > { %1144 = vmatpush3.bf16.msra.mxu0 %v491_v62 }
 0x420   : > { %1155 = vmatprep.subr.bf16.mxu0 %v1455_v8 }
 0x421   : > { %v590_v63 = vpop.xlane.xlu0 %589 }
 0x422   : > { %v591_v1 = vsub.f32 %v582_v43, %v590_v63 }
 0x424   : > { %v592_v2 = vmul.f32 1.442695, %v591_v1 }
 0x426   : > { %1286 = vpow2.f32 %v592_v2  ;;  %v1096_v2 = vld [vmem:[%s1791_s6] ss:$0 sm:$0xff] }
 0x42b   : > { %v1285_v3 = vpop.eup %1284 }
 0x42c   : > { %v483_v4 = vpack.c.bf16 %v1285_v3, %v1285_v3  ;;  %v480_v16 = vsel %vm427_vm2, %v1285_v3, 0.0 }
 0x42e   : > { %1146 = vmatmul.mubr.msk.bf16.vlgmr.msra.gmra.mxu0 %vm427_vm2, %v483_v4 }
 0x42f   : > { %1157 = vmatprep.mubr.msk.bf16.mxu0 %vm1456_vm1, %v1455_v8 }
 0x431   : > { %v828_v5 = vpop.xlane.xlu0 %827 }
 0x432   : > { %v829_v6 = vsub.f32 %v820_v52, %v828_v5 }
 0x433   : > { %v1287_v7 = vpop.eup %1286 }
 0x434   : > { %v830_v9 = vmul.f32 1.442695, %v829_v6  ;;  %v594_v10 = vsel %vm427_vm2, %v1287_v7, 0.0  ;;  %v597_v13 = vpack.c.bf16 %v1287_v7, %v1287_v7 }
 0x435   : > { %595 = vadd.xlane.f32.xlu0 %v594_v10  ;;  %v599_v11 = vpop.permute.xlu0 %598 }
 0x436   : > { %1288 = vpow2.f32 %v830_v9  ;;  %v604_v12 = vsel %vm489_vm3, %v599_v11, 0 }
 0x437   : > { %1156 = vmatpush3.bf16.msra.mxu0 %v604_v12 }
 0x438   : > { %1167 = vmatprep.subr.bf16.mxu0 %v1455_v8 }
 0x43a   : > { %1158 = vmatmul.mubr.msk.bf16.vlgmr.msra.gmra.mxu0 %vm427_vm2, %v597_v13 }
 0x43b   : > { %1169 = vmatprep.mubr.msk.bf16.mxu0 %vm1456_vm1, %v1455_v8 }
 0x443   : > { %v1289_v14 = vpop.eup %1288 }
 0x444   : > { %v832_v15 = vsel %vm427_vm2, %v1289_v14, 0.0  ;;  %v835_v27 = vpack.c.bf16 %v1289_v14, %v1289_v14 }
 0x445   : > { %833 = vadd.xlane.f32.xlu0 %v832_v15 }
 0x449   : > { %481 = vadd.xlane.f32.xlu0 %v480_v16 }
 0x44e   : > { %v709_v17 = vpop.xlane.xlu1 %708 }
 0x44f   : > { %v710_v18 = vsub.f32 %v701_v48, %v709_v17  ;;  %v1280_v48 = vld [vmem:[#allocation8 + $0x8] sm:$0xff]  }
 0x450   : > { %1186 = vmatpush3.bf16.msra.mxu1 %v1280_v48 }
 0x451   : > { %v711_v19 = vmul.f32 1.442695, %v710_v18  ;;  %1187 = vmatprep.subr.bf16.mxu1 %v1455_v8 }
 0x452   : > { %v718_v20 = vpop.permute.xlu1 %717 }
 0x453   : > { %1290 = vpow2.f32 %v711_v19  ;;  %v723_v21 = vsel %vm489_vm3, %v718_v20, 0 }
 0x454   : > { %1168 = vmatpush3.bf16.msra.mxu0 %v723_v21  ;;  %1188 = vmatpush3.bf16.msra.mxu1 %v1281_v51 }
 0x455   : > { %1179 = vmatprep.subr.bf16.mxu0 %v1455_v8 }
 0x456   : > { %v837_v23 = vpop.permute.xlu1 %836 }
 0x457   : > { %v842_v26 = vsel %vm489_vm3, %v837_v23, 0 }
 0x460   : > { %v1291_v22 = vpop.eup %1290 }
 0x461   : > { %v713_v24 = vsel %vm427_vm2, %v1291_v22, 0.0  ;;  %v716_v25 = vpack.c.bf16 %v1291_v22, %v1291_v22 }
 0x462   : > { %714 = vadd.xlane.f32.xlu1 %v713_v24 }
 0x463   : > { %1170 = vmatmul.mubr.msk.bf16.vlgmr.msra.gmra.mxu0 %vm427_vm2, %v716_v25 }
 0x464   : > { %1180 = vmatpush3.bf16.msra.mxu0 %v842_v26  ;;  %1181 = vmatprep.mubr.msk.bf16.mxu0 %vm1456_vm1, %v1455_v8 }
 0x46b   : > { %1182 = vmatmul.mubr.msk.bf16.vlgmr.msra.gmra.mxu0 %vm427_vm2, %v835_v27 }
 0x4be   : > { %v596_v28 = vpop.xlane.xlu0 %595 }
 0x4ce   : > { %v834_v29 = vpop.xlane.xlu0 %833 }
 0x4d2   : > { %v482_v30 = vpop.xlane.xlu0 %481 }
 0x4d3   : > { %1292 = vrcp.f32 %v482_v30 }
 0x4d4   : > { %1294 = vrcp.f32 %v596_v28 }
 0x4e0   : > { %v1293_v31 = vpop.eup %1292 }
 0x4e1   : > { %v1295_v38 = vpop.eup %1294 }
 0x4eb   : > { %v715_v45 = vpop.xlane.xlu1 %714 }
 0x4ec   : > { %1296 = vrcp.f32 %v715_v45 }
 0x4ed   : > { %1298 = vrcp.f32 %v834_v29 }
 0x4ee   : > { %v527_v32 = vpop.f32.mrf.mxu0 }
 0x4ef   : > { %v534_v33 = vmul.f32 %v1293_v31, %v527_v32 }
 0x4f0   : > { %v1147_v34 = vpop.f32.mrf.mxu0 }
 0x4f1   : > { %v535_v35 = vpack.c.bf16 %v534_v33, %v534_v33 }
 0x4f2   : > { %v530_v36 = vpop.f32.mrf.mxu0 }
 0x4f3   : > { %537 = vst.msk [vmem:[#allocation2] sm:$0xf] %vm536_vm4, %v535_v35 }
 0x4f4   : > { %v1148_v37 = vpop.f32.mrf.mxu0 }
 0x4f9   : > { %v1297_v46 = vpop.eup %1296 }
 0x4fa   : > { %v640_v39 = vpop.f32.mrf.mxu0  ;;  %v1299_v55 = vpop.eup %1298 }
 0x4fb   : > { %v647_v40 = vmul.f32 %v1295_v38, %v640_v39 }
 0x4fc   : > { %v1159_v41 = vpop.f32.mrf.mxu0 }
 0x4fd   : > { %v1104_v42 = vpack.c.bf16 %v647_v40, %v647_v40 }
 0x4fe   : > { %v643_v43 = vpop.f32.mrf.mxu0 }
 0x4ff   : > { %652 = vrot.lane.b32.xlu1 %v1104_v42, %s1468_s20 }
 0x500   : > { %v1160_v44 = vpop.f32.mrf.mxu0 }
 0x523   : > { %v759_v47 = vpop.f32.mrf.mxu0 }
 0x524   : > { %v766_v49 = vmul.f32 %v1297_v46, %v759_v47 }
 0x525   : > { %v1171_v50 = vpop.f32.mrf.mxu0 }
 0x526   : > { %v1105_v52 = vpack.c.bf16 %v766_v49, %v766_v49 }
 0x527   : > { %v762_v53 = vpop.f32.mrf.mxu0 }
 0x528   : > { %771 = vrot.lane.b32.xlu0 %v1105_v52, %s1469_s21 }
 0x529   : > { %v1172_v54 = vpop.f32.mrf.mxu0 }
 0x52b   : > { %v878_v56 = vpop.f32.mrf.mxu0 }
 0x52c   : > { %v885_v57 = vmul.f32 %v1299_v55, %v878_v56 }
 0x52d   : > { %v1183_v58 = vpop.f32.mrf.mxu0 }
 0x52e   : > { %v1106_v59 = vpack.c.bf16 %v885_v57, %v885_v57 }
 0x52f   : > { %v881_v60 = vpop.f32.mrf.mxu0 }
 0x530   : > { %890 = vrot.lane.b32.xlu1 %v1106_v59, %s1470_s22 }
 0x531   : > { %v1184_v61 = vpop.f32.mrf.mxu0 }
 0x571   : > { %v653_v62 = vpop.permute.xlu1 %652 }
 0x572   : > { %656 = vst.msk [vmem:[#allocation2] sm:$0xf] %vm655_vm5, %v653_v62 }
 0x59a   : > { %v772_v8 = vpop.permute.xlu0 %771 }
 0x59b   : > { %775 = vst.msk [vmem:[#allocation2] sm:$0xf] %vm774_vm6, %v772_v8 }
 0x5a2   : > { %v891_v63 = vpop.permute.xlu1 %890 }
 0x5a3   : > { %894 = vst.msk [vmem:[#allocation2] sm:$0xf] %vm893_vm7, %v891_v63 }
 0x5aa   : > { %v895_v1 = vld [vmem:[#allocation2] sm:$0xf] }
 0x5ab   : > { %1190 = vmatmul.mubr.msk.bf16.vlgmr.msra.gmra.mxu1 %vm325_vm0, %v895_v1 }
 0x66b   : > { %v956_v3 = vpop.f32.mrf.mxu1 }
 0x66c   : > { %v957_v4 = vadd.f32 %v1096_v2, %v956_v3 }
 0x66d   : > { %v1191_v5 = vpop.f32.mrf.mxu1 }
 0x66e   : > { %v962_v6 = vadd.f32 %v957_v4, %v1644_v0 }
 0x66f   : > { %v959_v7 = vpop.f32.mrf.mxu1 }
 0x670   : > { %963 = vst.msk [vmem:[%s322_s15] sm:$0xff] %vm325_vm0, %v962_v6 }
 0x671   : > { %v1192_v9 = vpop.f32.mrf.mxu1 }
 0x672   : > { %1393 = shalt.err (!%p1390_p9)
}
 0x673   : > { %s1394_s20 = scalar_lea.hbm %s1741_s5, 128  ;;  %s1398_s22 = scalar_lea.hbm %s1792_s7, 256 }
 0x674   : > { %p1395_p13 = scmp.ne.s32.totalorder %s1741_s5, %s1394_s20  ;;  %p1399_p4 = scmp.lt.s32.totalorder %s1741_s5, %s1792_s7 }
 0x675   : > { %p1400_p8 = scmp.lt.s32.totalorder %s1398_s22, %s1394_s20 }
 0x676   : > { %p1396_p5 = pnand %p1395_p13, %p1812_p0 }
 0x677   : > { %p1401_p3 = por %p1400_p8, %p1399_p4 }
 0x678   : > { %p1397_p10 = pneg %p1396_p5 }
 0x67a   : > { %p1402_p11 = pnand %p1401_p3, %p1397_p10 }
 0x67c   : > { %1405 = shalt.err (!%p1402_p11)
}
 0x67d   : > { %1203 = dma.vmem_to_hbm [thread:$0]  (%p1812_p0), %s1743_s19, 128, %s1741_s5, %s965_s28  }
 0x67e PF: > { %s990_s17 = sand.u32 1, %s1436_s24   ;;  %p1813_p1 = scmp.ne.s32.totalorder %s1800_s8, 0 }
 0x67f   : > { %p1814_p2 = scmp.ge.s32.totalorder %s1448_s27, 2  ;;  %s991_s15 = scalar_lea.sflag [#allocation5], %s990_s17 }
 0x681   : > { %p1217_p6 = pnand %p1814_p2, %p1813_p1 }
 0x683   : > { %p1218_p12 = pneg %p1217_p6 }
 0x685   : > { %1431 = dma.done.wait (%p1218_p12), %s991_s15, 128  }
 0x686   : > { %1433 = vsyncadd (%p1218_p12), %s991_s15, 4294967168  ;;  %p21_p7 = scmp.ge.s32.totalorder %s1584_s23, 4   ;;  %s1815_s24 = smov %s1440_s25 }
 0x687   : > { %s1816_s25 = smov %s1444_s26  ;;  %s1817_s26 = smov %s1600_s12 }
 0x688   : > { %s1818_s27 = smov %s1584_s23  ;;  %23 = sbr.rel (!%p21_p7) target bundleno = 9 (0x9), region = 101 }
 0x68d   :  { %996 = vsyncpa [#allocation4], 1 }
 0x68e   :  { %998 = vsyncpa [#allocation4 + $0x1], 1 }
 0x68f   :  { %999 = vsyncpa [#allocation7], 1 }
 0x690   :  { %1000 = vsyncpa [#allocation5], 1 }
 0x691   :  { %1002 = vsyncpa [#allocation5 + $0x1], 1 }

// kernel: tpu_custom_call.1
= control target key start
LH: loop header
LB: loop body
LE: loop exit
PB: predicated region body
PF: predicated region fallthrough
CT: control target
= control target key end

     0   :  { %s1785_s0 = inlined_call_operand.hbm [shape: f32[2,8,32], index: 0, kind: input, shape index: {}]   ;;  %s1786_s1 = inlined_call_operand.vmem [shape: f32[1,32], index: 1, kind: input, shape index: {}]   ;;  %s1787_s2 = inlined_call_operand.vmem [shape: f32[1,32], index: 2, kind: input, shape index: {}]   ;;  %s1788_s3 = inlined_call_operand.hbm [shape: bf16[32,96], index: 3, kind: input, shape index: {}]   ;;  %s1789_s4 = inlined_call_operand.vmem [shape: f32[1,96], index: 4, kind: input, shape index: {}]   ;;  %s1790_s5 = inlined_call_operand.hbm [shape: bf16[32,32], index: 5, kind: input, shape index: {}]   ;;  %s1791_s6 = inlined_call_operand.vmem [shape: f32[1,32], index: 6, kind: input, shape index: {}]   ;;  %s1792_s7 = inlined_call_operand.hbm [shape: f32[2,8,32], index: 7, kind: output, shape index: {}]  }
   0x1   :  { %1797 = sst [smem:[#allocation13_spill]] %s1788_s3 }
   0x2   :  { %1798 = sst [smem:[#allocation14_spill]] %s1790_s5 }
   0x3   :  { %12 = vsyncpa [#allocation4], 0 }
   0x4   :  { %14 = vsyncpa [#allocation4 + $0x1], 0 }
   0x5   :  { %15 = vsyncpa [#allocation7], 0 }
   0x6   :  { %16 = vsyncpa [#allocation5], 0 }
   0x7   :  { %18 = vsyncpa [#allocation5 + $0x1], 0  ;;  %s1512_s24 = smov 0   ;;  %s1514_s25 = smov 0  }
   0x8   :  { %s1516_s26 = smov 0   ;;  %s1518_s27 = smov 0  }
   0x9 LB: > { %s1533_s28 = sadd.s32 4294967295, %s1448_s27   ;;  %s1067_s29 = sadd.s32 4294967294, %s1448_s27   ;;  %s1448_s27 = sphi %s1518_s27, %s1818_s27   ;;  %s1444_s26 = sphi %s1516_s26, %s1817_s26   ;;  %s1440_s25 = sphi %s1514_s25, %s1816_s25   ;;  %s1436_s24 = sphi %s1512_s24, %s1815_s24  }
   0xa   : > { %p44_p0 = scmp.ne.s32.totalorder %s1440_s25, %s1436_s24  ;;  %p1793_p1 = scmp.eq.s32.totalorder %s1533_s28, 0 }
   0xb   : > { %p200_p3 = scmp.eq.s32.totalorder %s1067_s29, 1  ;;  %p1068_p5 = scmp.ge.s32.totalorder %s1448_s27, 1 }
   0xc   : > { %p1542_p4 = por %p1793_p1, %p44_p0  ;;  %p207_p7 = scmp.lt.s32.totalorder %s1448_s27, 3 }
   0xd   : > { %p1547_p6 = por %p200_p3, %p44_p0  ;;  %s1450_s10 = smov [#allocation6]  }
   0xe   : > { %s1799_s30 = scalar_select %p1542_p4, 1, 0 }
   0xf   : > { %s1800_s8 = scalar_select %p1547_p6, 1, 0 }
  0x10   : > { %p1552_p8 = pnand %p1068_p5, %p207_p7  ;;  %s225_s11 = sshll.u32 %s1450_s10, 4  ;;  %s226_s11 = int_to_ptr.vmem [resolvable:$true] %s225_s11 }
  0x11   : > { %s1451_s13 = smov [#allocation8]   ;;  %s1311_s15 = scalar_lea.vmem %s226_s11, 256 }
  0x12   : > { %s1801_s9 = scalar_select %p1552_p8, 1, 0 }
  0x13   : > { %p1205_p9 = pneg %p1552_p8  ;;  %s241_s14 = sshll.u32 %s1451_s13, 4  ;;  %s242_s14 = int_to_ptr.vmem [resolvable:$true] %s241_s14 }
  0x14   : > { %p1312_p13 = scmp.ne.s32.totalorder %s226_s11, %s1311_s15  ;;  %p1319_p5 = scmp.lt.s32.totalorder %s226_s11, %s226_s11 }
  0x15   : > { %p1561_p11 = pnand %p1205_p9, %p1793_p1  ;;  %p1320_p7 = scmp.lt.s32.totalorder %s1311_s15, %s1311_s15 }
  0x17   : > { %p1302_p12 = pneg %p1561_p11  ;;  %p1321_p10 = por %p1320_p7, %p1319_p5 }
  0x19   : > { %p1314_p0 = pnand %p1312_p13, %p1302_p12 }
  0x1b   : > { %p1315_p3 = pneg %p1314_p0 }
  0x1d   : > { %p1322_p9 = pnand %p1321_p10, %p1315_p3 }
  0x1f   : > { %1325 = shalt.err (!%p1322_p9)
}
  0x20   : > { %s1452_s16 = smov 64   ;;  %s1453_s17 = smov 4  }
  0x21   : > { %s1803_s3 = sld [smem:[#allocation13_spill]]  ;;  %s1337_s20 = scalar_lea.vmem %s242_s14, 256 }
  0x22   : > { %p1338_p1 = scmp.ne.s32.totalorder %s242_s14, %s1337_s20  ;;  %p1345_p2 = scmp.lt.s32.totalorder %s242_s14, %s242_s14 }
  0x23   : > { %p1346_p6 = scmp.lt.s32.totalorder %s1337_s20, %s1337_s20 }
  0x24   : > { %p1340_p13 = pnand %p1338_p1, %p1302_p12 }
  0x25   : > { %p1347_p5 = por %p1346_p6, %p1345_p2 }
  0x26   : > { %p1341_p0 = pneg %p1340_p13 }
  0x27   : > { %1208 = dma.hbm_to_vmem [thread:$0]  (!%p1561_p11), %s1803_s3, 256, %s226_s11, [#allocation7], %s1452_s16, %s1452_s16, %s1453_s17  }
  0x28   : > { %p1348_p10 = pnand %p1347_p5, %p1341_p0 }
  0x2a   : > { %1351 = shalt.err (!%p1348_p10)
}
  0x2b   : > { %s1804_s5 = sld [smem:[#allocation14_spill]]  ;;  %s1584_s23 = sadd.s32 1, %s1448_s27  }
  0x2c   : > { %s31_s29 = sadd.s32 1, %s1444_s26  ;;  %s28_s10 = ssub.s32 %s1448_s27, %s1584_s23 }
  0x2d   : > { %p38_p1 = scmp.ne.s32.totalorder %s1444_s26, %s1440_s25  ;;  %p29_p2 = scmp.eq.s32.totalorder %s28_s10, 0 }
  0x2e   : > { %p39_p6 = scmp.eq.s32.totalorder %s1448_s27, 0  ;;  %p1805_p12 = scmp.eq.s32.totalorder %s1533_s28, 1 }
  0x2f   : > { %p1222_p7 = scmp.lt.s32.totalorder %s1448_s27, 2  ;;  %s258_s13 = sand.u32 1, %s1444_s26  }
  0x30   : > { %p1594_p3 = por %p1805_p12, %p38_p1  ;;  %p40_p9 = por %p39_p6, %p38_p1 }
  0x31   : > { %1211 = dma.hbm_to_vmem [thread:$0]  (!%p1561_p11), %s1804_s5, 256, %s242_s14, [#allocation7], %s1452_s16, %s1452_s16, %s1453_s17  }
  0x32   : > { %s1806_s11 = scalar_select %p1594_p3, 1, 0 }
  0x33   : > { %s1600_s12 = scalar_select %p29_p2, %s1444_s26, %s31_s29  }
  0x34   : > { %s1072_s15 = sshll.u32 %s258_s13, 3  ;;  %s1073_s14 = sshll.u32 %s1448_s27, 7 }
  0x35   : > { %s1607_s18 = scalar_lea.hbm %s1785_s0, %s1073_s14  ;;  %s262_s19 = scalar_lea.vmem [#allocation3], %s1072_s15 }
  0x36   : > { %s269_s20 = sshll.u32 %s262_s19, 4  ;;  %p1609_p11 = pnand %p1222_p7, %p40_p9  ;;  %s270_s20 = int_to_ptr.vmem [resolvable:$true] %s269_s20 }
  0x37   : > { %s259_s22 = scalar_lea.sflag [#allocation4], %s258_s13  ;;  %s1352_s29 = scalar_lea.hbm %s1607_s18, 128 }
  0x38   : > { %p1353_p13 = scmp.ne.s32.totalorder %s1607_s18, %s1352_s29  ;;  %p1354_p0 = pneg %p1609_p11 }
  0x39   : > { %s1357_s16 = scalar_lea.hbm %s1785_s0, 256  ;;  %p1358_p1 = scmp.lt.s32.totalorder %s1607_s18, %s1785_s0 }
  0x3a   : > { %p1355_p5 = pnand %p1354_p0, %p1353_p13  ;;  %p1359_p2 = scmp.lt.s32.totalorder %s1357_s16, %s1352_s29 }
  0x3c   : > { %p1356_p10 = pneg %p1355_p5  ;;  %p1360_p6 = por %p1359_p2, %p1358_p1 }
  0x3e   : > { %p1361_p12 = pnand %p1360_p6, %p1356_p10 }
  0x40   : > { %1364 = shalt.err (!%p1361_p12)
}
  0x41   : > { %s1365_s19 = scalar_lea.vmem %s270_s20, 128  ;;  %s1454_s13 = smov [#allocation3]  }
  0x42   : > { %p1366_p7 = scmp.ne.s32.totalorder %s270_s20, %s1365_s19  ;;  %s1370_s3 = sshll.u32 %s1454_s13, 4  ;;  %s1371_s3 = int_to_ptr.vmem [resolvable:$false] %s1370_s3 }
  0x43   : > { %s1372_s5 = scalar_lea.vmem %s1371_s3, 256  ;;  %p1373_p13 = scmp.lt.s32.totalorder %s270_s20, %s1371_s3 }
  0x44   : > { %p1368_p9 = pnand %p1366_p7, %p1354_p0  ;;  %p1374_p5 = scmp.lt.s32.totalorder %s1372_s5, %s1365_s19 }
  0x46   : > { %p1369_p3 = pneg %p1368_p9  ;;  %p1375_p4 = por %p1374_p5, %p1373_p13 }
  0x48   : > { %p1376_p8 = pnand %p1375_p4, %p1369_p3 }
  0x4a   : > { %1379 = shalt.err (!%p1376_p8)
}
  0x4b   : > { %1215 = dma.hbm_to_vmem [thread:$0]  (!%p1609_p11), %s1607_s18, 128, %s270_s20, %s259_s22  }
  0x4c   : > { %p1808_p10 = scmp.ne.s32.totalorder %s1801_s9, 0 }
  0x4d   : > { %s1630_s29 = sand.u32 (!%p1808_p10), 1, %s1440_s25   ;;  %p1809_p4 = scmp.ne.s32.totalorder (!%p1808_p10), %s1799_s30, 0 }
  0x4e   : > { %278 = sbr.rel (%p1808_p10) target bundleno = 1662 (0x67e), region = 48  ;;  %s1075_s10 = sshll.u32 (!%p1808_p10), %s1630_s29, 3 }
  0x4f   : > { %s281_s3 = scalar_lea.sflag (!%p1808_p10), [#allocation4], %s1630_s29  ;;  %s284_s5 = scalar_lea.vmem (!%p1808_p10), [#allocation3], %s1075_s10 }
  0x53   : > { %1423 = dma.done.wait (%p1809_p4), %s281_s3, 128  }
  0x54   : > { %1425 = vsyncadd (%p1809_p4), %s281_s3, 4294967168  ;;  %p1810_p8 = scmp.eq.s32.totalorder %s1533_s28, 0 }
  0x56   : > { %1427 = dma.done.wait (%p1810_p8), [#allocation7], 512   ;;  %p1811_p3 = pmov %p1810_p8 }
  0x57   : > { %vm325_vm0 = vcmask 261120   ;;  %v1644_v0 = vld [vmem:[%s284_s5] sm:$0xff]  ;;  %v1278_v7 = vld [vmem:[#allocation6 + $0x8] sm:$0xff]   ;;  %v1455_v8 = vmov 0.0   ;;  %vm1456_vm1 = vmmov 0   ;;  %v1279_v9 = vld [vmem:[#allocation6] sm:$0xff]  }
  0x58   : > { %1429 = vsyncadd (%p1811_p3), [#allocation7], 4294966784  ;;  %v326_v1 = vsel %vm325_vm0, %v1644_v0, 0.0  ;;  %1129 = vmatprep.subr.bf16.mxu0 %v1455_v8  ;;  %1133 = vmatprep.mubr.msk.bf16.mxu0 %vm1456_vm1, %v1455_v8  ;;  %v1079_v14 = vld [vmem:[%s1786_s1] ss:$0 sm:$0xff]  ;;  %s1457_s14 = smov 120  }
  0x59   : > { %327 = vadd.xlane.f32.xlu0 %v326_v1  ;;  %1130 = vmatpush3.bf16.msra.mxu0 %v1278_v7  ;;  %v1080_v16 = vld [vmem:[%s1787_s2] ss:$0 sm:$0xff]  ;;  %s1458_s16 = smov 96   ;;  %s1459_s17 = smov 88   ;;  %vm427_vm2 = vcmask 64512   ;;  %vm489_vm3 = vcmask 1043456  }
  0x5a   : > { %1137 = vmatprep.subr.bf16.mxu1 %v1455_v8  ;;  %1131 = vmatprep.subr.bf16.mxu0 %v1455_v8  ;;  %v1081_v20 = vld [vmem:[%s1789_s4] ss:$0 sm:$0xff]  ;;  %s1460_s15 = smov 80   ;;  %s1461_s19 = smov 112   ;;  %vm536_vm4 = vcmask 60416   ;;  %vm655_vm5 = vcmask 126016  }
  0x5b   : > { %1139 = vmatprep.mubr.msk.bf16.mxu1 %vm1456_vm1, %v1455_v8  ;;  %s1462_s13 = smov 72   ;;  %s1463_s3 = smov 104   ;;  %vm774_vm6 = vcmask 191616   ;;  %vm893_vm7 = vcmask 257216  }
  0x5c   : > { %s1464_s5 = smov 64   ;;  %s1465_s30 = smov 56  }
  0x5d   : > { %1132 = vmatpush3.bf16.msra.mxu0 %v1279_v9  ;;  %s1466_s9 = smov 48   ;;  %s1467_s18 = smov 40  }
  0x5e   : > { %1143 = vmatprep.subr.bf16.mxu0 %v1455_v8  ;;  %s1468_s20 = smov 8   ;;  %s1469_s21 = smov 16  }
  0x5f   : > { %s1470_s22 = smov 24   ;;  %p1812_p0 = scmp.ne.s32.totalorder %s1806_s11, 0 }
  0xe2   : > { %v328_v2 = vpop.xlane.xlu0 %327 }
  0xe3   : > { %v330_v3 = vmul.f32 0.03125, %v328_v2 }
  0xe5   : > { %v331_v4 = vsub.f32 %v1644_v0, %v330_v3 }
  0xe7   : > { %v332_v5 = vmul.f32 %v331_v4, %v331_v4 }
  0xe9   : > { %v333_v6 = vsel %vm325_vm0, %v332_v5, 0.0 }
  0xea   : > { %334 = vadd.xlane.f32.xlu0 %v333_v6 }
 0x173   : > { %v335_v10 = vpop.xlane.xlu0 %334 }
 0x174   : > { %v336_v11 = vmul.f32 0.03125, %v335_v10 }
 0x176   : > { %v337_v12 = vadd.f32 1e-05, %v336_v11 }
 0x178   : > { %1282 = vrsqrt.f32 %v337_v12 }
 0x185   : > { %v1283_v13 = vpop.eup %1282 }
 0x186   : > { %v339_v15 = vmul.f32 %v1283_v13, %v331_v4 }
 0x188   : > { %v347_v17 = vmul.f32 %v1079_v14, %v339_v15 }
 0x18a   : > { %v355_v18 = vadd.f32 %v1080_v16, %v347_v17 }
 0x18c   : > { %v356_v19 = vpack.c.bf16 %v355_v18, %v355_v18 }
 0x18e   : > { %1134 = vmatmul.mubr.msk.bf16.vlgmr.msra.gmra.mxu0 %vm325_vm0, %v356_v19 }
 0x18f   : > { %1145 = vmatprep.mubr.msk.bf16.mxu0 %vm1456_vm1, %v1455_v8 }
 0x24e   : > { %v417_v21 = vpop.f32.mrf.mxu0 }
 0x24f   : > { %v418_v22 = vadd.f32 %v1081_v20, %v417_v21 }
 0x250   : > { %v1135_v23 = vpop.f32.mrf.mxu0 }
 0x251   : > { %v1670_v24 = vpack.c.bf16 %v418_v22, %v418_v22 }
 0x252   : > { %v420_v25 = vpop.f32.mrf.mxu0 }
 0x253   : > { %538 = vrot.lane.b32.xlu0 %v1670_v24, %s1457_s14  ;;  %425 = vrot.lane.b32.xlu1 %v1670_v24, %s1458_s16 }
 0x254   : > { %v1136_v26 = vpop.f32.mrf.mxu0 }
 0x257   : > { %540 = vrot.lane.b32.xlu1 %v1670_v24, %s1459_s17  ;;  %s1101_s17 = sshll.u32 %s1533_s28, 7  ;;  %s965_s28 = scalar_lea.sflag [#allocation5], %s1630_s29 }
 0x25b   : > { %659 = vrot.lane.b32.xlu1 %v1670_v24, %s1460_s15  ;;  %s322_s15 = scalar_lea.vmem [#allocation9], %s1075_s10 }
 0x25f   : > { %657 = vrot.lane.b32.xlu1 %v1670_v24, %s1461_s19  ;;  %s978_s19 = sshll.u32 %s322_s15, 4  ;;  %s1743_s19 = int_to_ptr.vmem [resolvable:$true] %s978_s19 }
 0x260   : > { %s1380_s10 = scalar_lea.vmem %s1743_s19, 128 }
 0x261   : > { %p1381_p11 = scmp.ne.s32.totalorder %s1743_s19, %s1380_s10 }
 0x263   : > { %778 = vrot.lane.b32.xlu1 %v1670_v24, %s1462_s13  ;;  %p1382_p1 = pnand %p1381_p11, %p1812_p0 }
 0x265   : > { %p1383_p2 = pneg %p1382_p1 }
 0x267   : > { %776 = vrot.lane.b32.xlu1 %v1670_v24, %s1463_s3 }
 0x2c5   : > { %v426_v27 = vpop.permute.xlu1 %425  ;;  %v539_v32 = vpop.permute.xlu0 %538 }
 0x2c6   : > { %v432_v28 = vsel %vm427_vm2, %v426_v27, 0 }
 0x2c7   : > { %1138 = vmatpush3.bf16.xpose.msra.mxu1 %v432_v28 }
 0x2c8   : > { %1149 = vmatprep.subr.bf16.mxu1 %v1455_v8 }
 0x2c9   : > { %v541_v29 = vpop.permute.xlu1 %540 }
 0x2ca   : > { %v546_v30 = vsel %vm427_vm2, %v541_v29, 0 }
 0x2cd   : > { %v660_v31 = vpop.permute.xlu1 %659 }
 0x2ce   : > { %1140 = vmatmul.mubr.msk.bf16.vlgmr.msra.gmra.mxu1 %vm427_vm2, %v1670_v24  ;;  %v665_v34 = vsel %vm427_vm2, %v660_v31, 0 }
 0x2cf   : > { %1150 = vmatpush3.bf16.xpose.msra.mxu1 %v546_v30  ;;  %1151 = vmatprep.mubr.msk.bf16.mxu1 %vm1456_vm1, %v1455_v8 }
 0x2d0   : > { %1161 = vmatprep.subr.bf16.mxu1 %v1455_v8 }
 0x2d1   : > { %v658_v33 = vpop.permute.xlu1 %657 }
 0x2d5   : > { %v779_v35 = vpop.permute.xlu1 %778 }
 0x2d6   : > { %1152 = vmatmul.mubr.msk.bf16.vlgmr.msra.gmra.mxu1 %vm427_vm2, %v539_v32  ;;  %v784_v36 = vsel %vm427_vm2, %v779_v35, 0 }
 0x2d7   : > { %1162 = vmatpush3.bf16.xpose.msra.mxu1 %v665_v34  ;;  %1163 = vmatprep.mubr.msk.bf16.mxu1 %vm1456_vm1, %v1455_v8 }
 0x2d8   : > { %1173 = vmatprep.subr.bf16.mxu1 %v1455_v8 }
 0x2d9   : > { %v777_v37 = vpop.permute.xlu1 %776 }
 0x2de   : > { %1164 = vmatmul.mubr.msk.bf16.vlgmr.msra.gmra.mxu1 %vm427_vm2, %v658_v33 }
 0x2df   : > { %1174 = vmatpush3.bf16.xpose.msra.mxu1 %v784_v36  ;;  %1175 = vmatprep.mubr.msk.bf16.mxu1 %vm1456_vm1, %v1455_v8 }
 0x2e0   : > { %1185 = vmatprep.subr.bf16.mxu1 %v1455_v8 }
 0x2e6   : > { %1176 = vmatmul.mubr.msk.bf16.vlgmr.msra.gmra.mxu1 %vm427_vm2, %v777_v37 }
 0x2e7   : > { %1189 = vmatprep.mubr.msk.bf16.mxu1 %vm1456_vm1, %v1455_v8 }
 0x38e   : > { %v468_v38 = vpop.f32.mrf.mxu1 }
 0x38f   : > { %v474_v39 = vsel %vm427_vm2, %v468_v38, -inf }
 0x390   : > { %475 = vmax.xlane.f32.xlu1 %v474_v39  ;;  %v1141_v40 = vpop.f32.mrf.mxu1 }
 0x392   : > { %v471_v41 = vpop.f32.mrf.mxu1 }
 0x394   : > { %v1142_v42 = vpop.f32.mrf.mxu1 }
 0x396   : > { %v582_v43 = vpop.f32.mrf.mxu1 }
 0x397   : > { %v588_v44 = vsel %vm427_vm2, %v582_v43, -inf }
 0x398   : > { %589 = vmax.xlane.f32.xlu0 %v588_v44  ;;  %v1153_v45 = vpop.f32.mrf.mxu1 }
 0x39a   : > { %v585_v46 = vpop.f32.mrf.mxu1 }
 0x39c   : > { %v1154_v47 = vpop.f32.mrf.mxu1 }
 0x39e   : > { %v701_v48 = vpop.f32.mrf.mxu1 }
 0x39f   : > { %v707_v57 = vsel %vm427_vm2, %v701_v48, -inf }
 0x3a0   : > { %v1165_v49 = vpop.f32.mrf.mxu1 }
 0x3a1   : > { %484 = vrot.lane.b32.xlu1 %v1670_v24, %s1464_s5  ;;  %s1741_s5 = scalar_lea.hbm %s1792_s7, %s1101_s17 }
 0x3a2   : > { %v704_v50 = vpop.f32.mrf.mxu1 }
 0x3a4   : > { %v1166_v51 = vpop.f32.mrf.mxu1 }
 0x3a5   : > { %v1281_v51 = vld [vmem:[#allocation8] sm:$0xff]  }
 0x3a6   : > { %v820_v52 = vpop.f32.mrf.mxu1 }
 0x3a7   : > { %v826_v53 = vsel %vm427_vm2, %v820_v52, -inf }
 0x3a8   : > { %827 = vmax.xlane.f32.xlu0 %v826_v53  ;;  %v1177_v54 = vpop.f32.mrf.mxu1 }
 0x3aa   : > { %v823_v55 = vpop.f32.mrf.mxu1 }
 0x3ac   : > { %v1178_v56 = vpop.f32.mrf.mxu1 }
 0x3be   : > { %598 = vrot.lane.b32.xlu0 %v1670_v24, %s1465_s30  ;;  %s1471_s30 = smov [#allocation9]  }
 0x3c5   : > { %708 = vmax.xlane.f32.xlu1 %v707_v57 }
 0x3d6   : > { %717 = vrot.lane.b32.xlu1 %v1670_v24, %s1466_s9  ;;  %s1384_s9 = sshll.u32 %s1471_s30, 4  ;;  %s1385_s9 = int_to_ptr.vmem [resolvable:$false] %s1384_s9 }
 0x3d7   : > { %p1387_p6 = scmp.lt.s32.totalorder %s1743_s19, %s1385_s9 }
 0x3da   : > { %836 = vrot.lane.b32.xlu1 %v1670_v24, %s1467_s18  ;;  %s1386_s18 = scalar_lea.vmem %s1385_s9, 256 }
 0x3db   : > { %p1388_p12 = scmp.lt.s32.totalorder %s1386_s18, %s1380_s10 }
 0x3dd   : > { %p1389_p7 = por %p1388_p12, %p1387_p6 }
 0x3df   : > { %p1390_p9 = pnand %p1389_p7, %p1383_p2 }
 0x419   : > { %v476_v58 = vpop.xlane.xlu1 %475 }
 0x41a   : > { %v477_v59 = vsub.f32 %v468_v38, %v476_v58 }
 0x41c   : > { %v478_v60 = vmul.f32 1.442695, %v477_v59 }
 0x41d   : > { %v485_v61 = vpop.permute.xlu1 %484 }
 0x41e   : > { %1284 = vpow2.f32 %v478_v60  ;;  %v491_v62 = vsel %vm489_vm3, %v485_v61, 0 }
 0x41f   : > { %1144 = vmatpush3.bf16.msra.mxu0 %v491_v62 }
 0x420   : > { %1155 = vmatprep.subr.bf16.mxu0 %v1455_v8 }
 0x421   : > { %v590_v63 = vpop.xlane.xlu0 %589 }
 0x422   : > { %v591_v1 = vsub.f32 %v582_v43, %v590_v63 }
 0x424   : > { %v592_v2 = vmul.f32 1.442695, %v591_v1 }
 0x426   : > { %1286 = vpow2.f32 %v592_v2  ;;  %v1096_v2 = vld [vmem:[%s1791_s6] ss:$0 sm:$0xff] }
 0x42b   : > { %v1285_v3 = vpop.eup %1284 }
 0x42c   : > { %v483_v4 = vpack.c.bf16 %v1285_v3, %v1285_v3  ;;  %v480_v16 = vsel %vm427_vm2, %v1285_v3, 0.0 }
 0x42e   : > { %1146 = vmatmul.mubr.msk.bf16.vlgmr.msra.gmra.mxu0 %vm427_vm2, %v483_v4 }
 0x42f   : > { %1157 = vmatprep.mubr.msk.bf16.mxu0 %vm1456_vm1, %v1455_v8 }
 0x431   : > { %v828_v5 = vpop.xlane.xlu0 %827 }
 0x432   : > { %v829_v6 = vsub.f32 %v820_v52, %v828_v5 }
 0x433   : > { %v1287_v7 = vpop.eup %1286 }
 0x434   : > { %v830_v9 = vmul.f32 1.442695, %v829_v6  ;;  %v594_v10 = vsel %vm427_vm2, %v1287_v7, 0.0  ;;  %v597_v13 = vpack.c.bf16 %v1287_v7, %v1287_v7 }
 0x435   : > { %595 = vadd.xlane.f32.xlu0 %v594_v10  ;;  %v599_v11 = vpop.permute.xlu0 %598 }
 0x436   : > { %1288 = vpow2.f32 %v830_v9  ;;  %v604_v12 = vsel %vm489_vm3, %v599_v11, 0 }
 0x437   : > { %1156 = vmatpush3.bf16.msra.mxu0 %v604_v12 }
 0x438   : > { %1167 = vmatprep.subr.bf16.mxu0 %v1455_v8 }
 0x43a   : > { %1158 = vmatmul.mubr.msk.bf16.vlgmr.msra.gmra.mxu0 %vm427_vm2, %v597_v13 }
 0x43b   : > { %1169 = vmatprep.mubr.msk.bf16.mxu0 %vm1456_vm1, %v1455_v8 }
 0x443   : > { %v1289_v14 = vpop.eup %1288 }
 0x444   : > { %v832_v15 = vsel %vm427_vm2, %v1289_v14, 0.0  ;;  %v835_v27 = vpack.c.bf16 %v1289_v14, %v1289_v14 }
 0x445   : > { %833 = vadd.xlane.f32.xlu0 %v832_v15 }
 0x449   : > { %481 = vadd.xlane.f32.xlu0 %v480_v16 }
 0x44e   : > { %v709_v17 = vpop.xlane.xlu1 %708 }
 0x44f   : > { %v710_v18 = vsub.f32 %v701_v48, %v709_v17  ;;  %v1280_v48 = vld [vmem:[#allocation8 + $0x8] sm:$0xff]  }
 0x450   : > { %1186 = vmatpush3.bf16.msra.mxu1 %v1280_v48 }
 0x451   : > { %v711_v19 = vmul.f32 1.442695, %v710_v18  ;;  %1187 = vmatprep.subr.bf16.mxu1 %v1455_v8 }
 0x452   : > { %v718_v20 = vpop.permute.xlu1 %717 }
 0x453   : > { %1290 = vpow2.f32 %v711_v19  ;;  %v723_v21 = vsel %vm489_vm3, %v718_v20, 0 }
 0x454   : > { %1168 = vmatpush3.bf16.msra.mxu0 %v723_v21  ;;  %1188 = vmatpush3.bf16.msra.mxu1 %v1281_v51 }
 0x455   : > { %1179 = vmatprep.subr.bf16.mxu0 %v1455_v8 }
 0x456   : > { %v837_v23 = vpop.permute.xlu1 %836 }
 0x457   : > { %v842_v26 = vsel %vm489_vm3, %v837_v23, 0 }
 0x460   : > { %v1291_v22 = vpop.eup %1290 }
 0x461   : > { %v713_v24 = vsel %vm427_vm2, %v1291_v22, 0.0  ;;  %v716_v25 = vpack.c.bf16 %v1291_v22, %v1291_v22 }
 0x462   : > { %714 = vadd.xlane.f32.xlu1 %v713_v24 }
 0x463   : > { %1170 = vmatmul.mubr.msk.bf16.vlgmr.msra.gmra.mxu0 %vm427_vm2, %v716_v25 }
 0x464   : > { %1180 = vmatpush3.bf16.msra.mxu0 %v842_v26  ;;  %1181 = vmatprep.mubr.msk.bf16.mxu0 %vm1456_vm1, %v1455_v8 }
 0x46b   : > { %1182 = vmatmul.mubr.msk.bf16.vlgmr.msra.gmra.mxu0 %vm427_vm2, %v835_v27 }
 0x4be   : > { %v596_v28 = vpop.xlane.xlu0 %595 }
 0x4ce   : > { %v834_v29 = vpop.xlane.xlu0 %833 }
 0x4d2   : > { %v482_v30 = vpop.xlane.xlu0 %481 }
 0x4d3   : > { %1292 = vrcp.f32 %v482_v30 }
 0x4d4   : > { %1294 = vrcp.f32 %v596_v28 }
 0x4e0   : > { %v1293_v31 = vpop.eup %1292 }
 0x4e1   : > { %v1295_v38 = vpop.eup %1294 }
 0x4eb   : > { %v715_v45 = vpop.xlane.xlu1 %714 }
 0x4ec   : > { %1296 = vrcp.f32 %v715_v45 }
 0x4ed   : > { %1298 = vrcp.f32 %v834_v29 }
 0x4ee   : > { %v527_v32 = vpop.f32.mrf.mxu0 }
 0x4ef   : > { %v534_v33 = vmul.f32 %v1293_v31, %v527_v32 }
 0x4f0   : > { %v1147_v34 = vpop.f32.mrf.mxu0 }
 0x4f1   : > { %v535_v35 = vpack.c.bf16 %v534_v33, %v534_v33 }
 0x4f2   : > { %v530_v36 = vpop.f32.mrf.mxu0 }
 0x4f3   : > { %537 = vst.msk [vmem:[#allocation2] sm:$0xf] %vm536_vm4, %v535_v35 }
 0x4f4   : > { %v1148_v37 = vpop.f32.mrf.mxu0 }
 0x4f9   : > { %v1297_v46 = vpop.eup %1296 }
 0x4fa   : > { %v640_v39 = vpop.f32.mrf.mxu0  ;;  %v1299_v55 = vpop.eup %1298 }
 0x4fb   : > { %v647_v40 = vmul.f32 %v1295_v38, %v640_v39 }
 0x4fc   : > { %v1159_v41 = vpop.f32.mrf.mxu0 }
 0x4fd   : > { %v1104_v42 = vpack.c.bf16 %v647_v40, %v647_v40 }
 0x4fe   : > { %v643_v43 = vpop.f32.mrf.mxu0 }
 0x4ff   : > { %652 = vrot.lane.b32.xlu1 %v1104_v42, %s1468_s20 }
 0x500   : > { %v1160_v44 = vpop.f32.mrf.mxu0 }
 0x523   : > { %v759_v47 = vpop.f32.mrf.mxu0 }
 0x524   : > { %v766_v49 = vmul.f32 %v1297_v46, %v759_v47 }
 0x525   : > { %v1171_v50 = vpop.f32.mrf.mxu0 }
 0x526   : > { %v1105_v52 = vpack.c.bf16 %v766_v49, %v766_v49 }
 0x527   : > { %v762_v53 = vpop.f32.mrf.mxu0 }
 0x528   : > { %771 = vrot.lane.b32.xlu0 %v1105_v52, %s1469_s21 }
 0x529   : > { %v1172_v54 = vpop.f32.mrf.mxu0 }
 0x52b   : > { %v878_v56 = vpop.f32.mrf.mxu0 }
 0x52c   : > { %v885_v57 = vmul.f32 %v1299_v55, %v878_v56 }
 0x52d   : > { %v1183_v58 = vpop.f32.mrf.mxu0 }
 0x52e   : > { %v1106_v59 = vpack.c.bf16 %v885_v57, %v885_v57 }
 0x52f   : > { %v881_v60 = vpop.f32.mrf.mxu0 }
 0x530   : > { %890 = vrot.lane.b32.xlu1 %v1106_v59, %s1470_s22 }
 0x531   : > { %v1184_v61 = vpop.f32.mrf.mxu0 }
 0x571   : > { %v653_v62 = vpop.permute.xlu1 %652 }
 0x572   : > { %656 = vst.msk [vmem:[#allocation2] sm:$0xf] %vm655_vm5, %v653_v62 }
 0x59a   : > { %v772_v8 = vpop.permute.xlu0 %771 }
 0x59b   : > { %775 = vst.msk [vmem:[#allocation2] sm:$0xf] %vm774_vm6, %v772_v8 }
 0x5a2   : > { %v891_v63 = vpop.permute.xlu1 %890 }
 0x5a3   : > { %894 = vst.msk [vmem:[#allocation2] sm:$0xf] %vm893_vm7, %v891_v63 }
 0x5aa   : > { %v895_v1 = vld [vmem:[#allocation2] sm:$0xf] }
 0x5ab   : > { %1190 = vmatmul.mubr.msk.bf16.vlgmr.msra.gmra.mxu1 %vm325_vm0, %v895_v1 }
 0x66b   : > { %v956_v3 = vpop.f32.mrf.mxu1 }
 0x66c   : > { %v957_v4 = vadd.f32 %v1096_v2, %v956_v3 }
 0x66d   : > { %v1191_v5 = vpop.f32.mrf.mxu1 }
 0x66e   : > { %v962_v6 = vadd.f32 %v957_v4, %v1644_v0 }
 0x66f   : > { %v959_v7 = vpop.f32.mrf.mxu1 }
 0x670   : > { %963 = vst.msk [vmem:[%s322_s15] sm:$0xff] %vm325_vm0, %v962_v6 }
 0x671   : > { %v1192_v9 = vpop.f32.mrf.mxu1 }
 0x672   : > { %1393 = shalt.err (!%p1390_p9)
}
 0x673   : > { %s1394_s20 = scalar_lea.hbm %s1741_s5, 128  ;;  %s1398_s22 = scalar_lea.hbm %s1792_s7, 256 }
 0x674   : > { %p1395_p13 = scmp.ne.s32.totalorder %s1741_s5, %s1394_s20  ;;  %p1399_p4 = scmp.lt.s32.totalorder %s1741_s5, %s1792_s7 }
 0x675   : > { %p1400_p8 = scmp.lt.s32.totalorder %s1398_s22, %s1394_s20 }
 0x676   : > { %p1396_p5 = pnand %p1395_p13, %p1812_p0 }
 0x677   : > { %p1401_p3 = por %p1400_p8, %p1399_p4 }
 0x678   : > { %p1397_p10 = pneg %p1396_p5 }
 0x67a   : > { %p1402_p11 = pnand %p1401_p3, %p1397_p10 }
 0x67c   : > { %1405 = shalt.err (!%p1402_p11)
}
 0x67d   : > { %1203 = dma.vmem_to_hbm [thread:$0]  (%p1812_p0), %s1743_s19, 128, %s1741_s5, %s965_s28  }
 0x67e PF: > { %s990_s17 = sand.u32 1, %s1436_s24   ;;  %p1813_p1 = scmp.ne.s32.totalorder %s1800_s8, 0 }
 0x67f   : > { %p1814_p2 = scmp.ge.s32.totalorder %s1448_s27, 2  ;;  %s991_s15 = scalar_lea.sflag [#allocation5], %s990_s17 }
 0x681   : > { %p1217_p6 = pnand %p1814_p2, %p1813_p1 }
 0x683   : > { %p1218_p12 = pneg %p1217_p6 }
 0x685   : > { %1431 = dma.done.wait (%p1218_p12), %s991_s15, 128  }
 0x686   : > { %1433 = vsyncadd (%p1218_p12), %s991_s15, 4294967168  ;;  %p21_p7 = scmp.ge.s32.totalorder %s1584_s23, 4   ;;  %s1815_s24 = smov %s1440_s25 }
 0x687   : > { %s1816_s25 = smov %s1444_s26  ;;  %s1817_s26 = smov %s1600_s12 }
 0x688   : > { %s1818_s27 = smov %s1584_s23  ;;  %23 = sbr.rel (!%p21_p7) target bundleno = 9 (0x9), region = 101 }
 0x68d   :  { %996 = vsyncpa [#allocation4], 1 }
 0x68e   :  { %998 = vsyncpa [#allocation4 + $0x1], 1 }
 0x68f   :  { %999 = vsyncpa [#allocation7], 1 }
 0x690   :  { %1000 = vsyncpa [#allocation5], 1 }
 0x691   :  { %1002 = vsyncpa [#allocation5 + $0x1], 1 }

</bundles_post_ra>
